<compile_context>
chip_gen: v6e
topology: v6e:2x2x1
jax: 0.10.0
libtpu: 0.0.40
codegen_flags: <defaults>
</compile_context>

<pallas_src>
import math

import jax
import jax.numpy as jnp
from jax.experimental import pallas as pl
from jax.experimental.pallas import tpu as pltpu

_LANE = 128
_TL_MAX = 1024           # lane-dense time tile (multiple of 128)
_BN_EPS = 1e-5
_VMEM_LIMIT = 64 * 1024 * 1024
_HI = jax.lax.Precision.HIGHEST


# ---------------------------------------------------------------------------
# small helpers
# ---------------------------------------------------------------------------
def _round_up(x, m):
    return ((x + m - 1) // m) * m


def _cdiv(a, b):
    return -(-a // b)


def _dot_precision(dtype):
    # bf16 (default) is the native MXU input -> default precision.  The f32
    # path keeps exact multi-pass matmuls so it can be used as a gold check.
    return _HI if jnp.dtype(dtype) == jnp.dtype(jnp.float32) else None


def fold_weightnorm_conv_bn(w_v, w_g, bias, gamma, beta, mean, var, eps=_BN_EPS):
    """Fold weight_norm(Conv1d) + eval-mode BatchNorm1d into
    (effective weight (C_out, C_in, K), per-channel shift (C_out,))."""
    norm = jnp.sqrt(jnp.sum(w_v * w_v, axis=(1, 2), keepdims=True))
    w = w_g * w_v / norm
    scale = gamma / jnp.sqrt(var + eps)
    w_eff = w * scale[:, None, None]
    shift = (bias - mean) * scale + beta
    return w_eff, shift


def se_gate(h, w1, w2):
    """Squeeze-excite gate (reference helper): (B, C, L) -> (B, C)."""
    y = jnp.mean(h, axis=-1)
    a = jnp.maximum(jnp.dot(y, w1.T, precision=_HI), 0.0)
    return jax.nn.sigmoid(jnp.dot(a, w2.T, precision=_HI))


# ---------------------------------------------------------------------------
# fused TemporalBlock kernel:
#   conv1+BN1+ReLU -> conv2+BN2+ReLU [+ residual (+1x1 downsample) + ReLU]
#   [+ masked partial time-sum of h2 for the SE squeeze]
# Causal history of x and h1 is carried across time tiles in VMEM scratch.
# ---------------------------------------------------------------------------
def _make_fused_block_kernel(K, dilation, TL, HXP, C_in, C_out, cdtype,
                             fuse_residual, has_down, emit_sum, valid_len):
    prec = _dot_precision(cdtype)

    def kernel(*refs):
        it = iter(refs)
        x_ref = next(it)                    # (1, C_in, TL)
        w1_ref = next(it)                   # (K, C_out, C_in)
        s1_ref = next(it)                   # (C_out, 1) f32
        w2_ref = next(it)                   # (K, C_out, C_out)
        s2_ref = next(it)                   # (C_out, 1) f32
        wd_ref = bd_ref = None
        if fuse_residual and has_down:
            wd_ref = next(it)               # (C_out, C_in) f32
            bd_ref = next(it)               # (C_out, 1)    f32
        o_ref = next(it)                    # (1, C_out, TL)
        sum_ref = next(it) if emit_sum else None   # (1, C_out, 1) f32
        xwin_ref = next(it)                 # (C_in,  HXP + TL)  cdtype scratch
        h1win_ref = next(it)                # (C_out, HXP + TL)  cdtype scratch

        l = pl.program_id(1)

        # --- causal history management (carry across time tiles) ------------
        if HXP > 0:
            @pl.when(l == 0)
            def _init_history():            # left edge: zero padding (causal)
                xwin_ref[:, :HXP] = jnp.zeros((C_in, HXP), cdtype)
                h1win_ref[:, :HXP] = jnp.zeros((C_out, HXP), cdtype)

            @pl.when(l > 0)
            def _carry_history():           # last HXP columns of previous tile
                xwin_ref[:, :HXP] = xwin_ref[:, TL:TL + HXP]
                h1win_ref[:, :HXP] = h1win_ref[:, TL:TL + HXP]

        xblk = x_ref[0]                     # (C_in, TL)
        xwin_ref[:, HXP:HXP + TL] = xblk

        # --- conv1 (+ folded BN1) + ReLU ------------------------------------
        acc1 = None
        for k in range(K):
            off = HXP - (K - 1 - k) * dilation
            tap = jnp.dot(w1_ref[k], xwin_ref[:, off:off + TL],
                          preferred_element_type=jnp.float32, precision=prec)
            acc1 = tap if acc1 is None else acc1 + tap
        h1 = jnp.maximum(acc1 + s1_ref[...], 0.0)
        h1win_ref[:, HXP:HXP + TL] = h1.astype(cdtype)

        # --- conv2 (+ folded BN2) + ReLU ------------------------------------
        acc2 = None
        for k in range(K):
            off = HXP - (K - 1 - k) * dilation
            tap = jnp.dot(w2_ref[k], h1win_ref[:, off:off + TL],
                          preferred_element_type=jnp.float32, precision=prec)
            acc2 = tap if acc2 is None else acc2 + tap
        h2 = jnp.maximum(acc2 + s2_ref[...], 0.0)

        # --- residual path (only when no SE gate is needed) -----------------
        if fuse_residual:
            if has_down:
                r = jnp.dot(wd_ref[...], xblk.astype(jnp.float32),
                            preferred_element_type=jnp.float32,
                            precision=prec) + bd_ref[...]
            else:
                r = xblk.astype(jnp.float32)
            y = jnp.maximum(h2 + r, 0.0)
        else:
            y = h2
        o_ref[0] = y.astype(o_ref.dtype)

        # --- SE squeeze: masked partial time-sum of h2 -----------------------
        if emit_sum:
            col = l * TL + jax.lax.broadcasted_iota(jnp.int32, (1, TL), 1)
            mask = (col < valid_len).astype(jnp.float32)
            part = jnp.sum(h2 * mask, axis=-1, keepdims=True)   # (C_out, 1)

            @pl.when(l == 0)
            def _init_sum():
                sum_ref[0] = part

            @pl.when(l > 0)
            def _acc_sum():
                sum_ref[0] = sum_ref[0] + part

    return kernel


def temporal_block_fused(x, w1, s1, w2, s2, dilation, TL, *, fuse_residual,
                         down_w=None, down_b=None, emit_sum=False,
                         valid_len=0):
    """One fused TemporalBlock pass.  x: (B, C_in, Lp) with Lp % TL == 0."""
    B, C_in, Lp = x.shape
    C_out = w1.shape[0]
    K = w1.shape[2]
    P = (K - 1) * dilation
    HXP = _round_up(P, _LANE) if P > 0 else 0
    if HXP > TL:
        raise ValueError(f"halo {HXP} exceeds time tile {TL}; raise tl_max")
    n_l = Lp // TL
    assert n_l * TL == Lp
    cdtype = x.dtype

    w1_taps = jnp.transpose(w1, (2, 0, 1)).astype(cdtype)    # (K, C_out, C_in)
    w2_taps = jnp.transpose(w2, (2, 0, 1)).astype(cdtype)    # (K, C_out, C_out)
    s1_2d = s1.reshape(C_out, 1).astype(jnp.float32)
    s2_2d = s2.reshape(C_out, 1).astype(jnp.float32)

    has_down = down_w is not None
    args = [x, w1_taps, s1_2d, w2_taps, s2_2d]
    in_specs = [
        pl.BlockSpec((1, C_in, TL), lambda b, l: (b, 0, l)),
        pl.BlockSpec((K, C_out, C_in), lambda b, l: (0, 0, 0)),
        pl.BlockSpec((C_out, 1), lambda b, l: (0, 0)),
        pl.BlockSpec((K, C_out, C_out), lambda b, l: (0, 0, 0)),
        pl.BlockSpec((C_out, 1), lambda b, l: (0, 0)),
    ]
    if fuse_residual and has_down:
        args += [down_w.astype(jnp.float32),
                 down_b.reshape(C_out, 1).astype(jnp.float32)]
        in_specs += [pl.BlockSpec((C_out, C_in), lambda b, l: (0, 0)),
                     pl.BlockSpec((C_out, 1), lambda b, l: (0, 0))]

    out_shapes = [jax.ShapeDtypeStruct((B, C_out, Lp), cdtype)]
    out_specs = [pl.BlockSpec((1, C_out, TL), lambda b, l: (b, 0, l))]
    if emit_sum:
        out_shapes.append(jax.ShapeDtypeStruct((B, C_out, 1), jnp.float32))
        out_specs.append(pl.BlockSpec((1, C_out, 1), lambda b, l: (b, 0, 0)))

    kernel = _make_fused_block_kernel(K, dilation, TL, HXP, C_in, C_out,
                                      cdtype, fuse_residual, has_down,
                                      emit_sum, int(valid_len))

    itemsize = jnp.dtype(cdtype).itemsize
    flops = 2 * B * Lp * K * (C_in * C_out + C_out * C_out)
    if fuse_residual and has_down:
        flops += 2 * B * Lp * C_in * C_out
    bytes_accessed = itemsize * B * Lp * (C_in + C_out)

    return pl.pallas_call(
        kernel,
        out_shape=tuple(out_shapes) if emit_sum else out_shapes[0],
        grid_spec=pltpu.PrefetchScalarGridSpec(
            num_scalar_prefetch=0,
            grid=(B, n_l),
            in_specs=in_specs,
            out_specs=tuple(out_specs) if emit_sum else out_specs[0],
            scratch_shapes=[pltpu.VMEM((C_in, HXP + TL), cdtype),
                            pltpu.VMEM((C_out, HXP + TL), cdtype)],
        ),
        compiler_params=pltpu.CompilerParams(
            # batch axis feeds both TensorCores; time axis is sequential
            # because causal history is carried across tiles in scratch.
            dimension_semantics=("parallel", "arbitrary"),
            vmem_limit_bytes=_VMEM_LIMIT,
        ),
        cost_estimate=pl.CostEstimate(flops=int(flops), transcendentals=0,
                                      bytes_accessed=int(bytes_accessed)),
    )(*args)


# ---------------------------------------------------------------------------
# SE gate application: out = relu(h2 * gate + residual_path(x))
# ---------------------------------------------------------------------------
def _make_scale_residual_kernel(has_down, cdtype):
    prec = _dot_precision(cdtype)

    def kernel(*refs):
        it = iter(refs)
        h_ref = next(it)                 # (1, C, TL)
        g_ref = next(it)                 # (1, C, 1) f32
        r_ref = next(it)                 # (1, C_in, TL)
        wd_ref = bd_ref = None
        if has_down:
            wd_ref = next(it)            # (C, C_in) f32
            bd_ref = next(it)            # (C, 1)    f32
        o_ref = next(it)                 # (1, C, TL)

        y = h_ref[0].astype(jnp.float32) * g_ref[0]
        if has_down:
            r = jnp.dot(wd_ref[...], r_ref[0].astype(jnp.float32),
                        preferred_element_type=jnp.float32,
                        precision=prec) + bd_ref[...]
        else:
            r = r_ref[0].astype(jnp.float32)
        o_ref[0] = jnp.maximum(y + r, 0.0).astype(o_ref.dtype)

    return kernel


def se_scale_residual(h2, gate, x, down_w, down_b, TL):
    B, C, Lp = h2.shape
    C_in = x.shape[1]
    n_l = Lp // TL
    gate3 = gate[:, :, None].astype(jnp.float32)
    has_down = down_w is not None

    args = [h2, gate3, x]
    specs = [pl.BlockSpec((1, C, TL), lambda b, l: (b, 0, l)),
             pl.BlockSpec((1, C, 1), lambda b, l: (b, 0, 0)),
             pl.BlockSpec((1, C_in, TL), lambda b, l: (b, 0, l))]
    flops = 0
    if has_down:
        args += [down_w.astype(jnp.float32),
                 down_b.reshape(C, 1).astype(jnp.float32)]
        specs += [pl.BlockSpec((C, C_in), lambda b, l: (0, 0)),
                  pl.BlockSpec((C, 1), lambda b, l: (0, 0))]
        flops = 2 * B * Lp * C_in * C
    itemsize = jnp.dtype(h2.dtype).itemsize
    bytes_accessed = itemsize * B * Lp * (2 * C + C_in)

    return pl.pallas_call(
        _make_scale_residual_kernel(has_down, h2.dtype),
        out_shape=jax.ShapeDtypeStruct((B, C, Lp), h2.dtype),
        grid_spec=pltpu.PrefetchScalarGridSpec(
            num_scalar_prefetch=0,
            grid=(B, n_l),
            in_specs=specs,
            out_specs=pl.BlockSpec((1, C, TL), lambda b, l: (b, 0, l)),
        ),
        compiler_params=pltpu.CompilerParams(
            dimension_semantics=("parallel", "parallel"),
            vmem_limit_bytes=_VMEM_LIMIT,
        ),
        cost_estimate=pl.CostEstimate(flops=int(flops), transcendentals=0,
                                      bytes_accessed=int(bytes_accessed)),
    )(*args)


# ---------------------------------------------------------------------------
# TemporalBlock / TemporalConvNet forward (kernel path)
# ---------------------------------------------------------------------------
def temporal_block_forward(x, p, dilation, use_se, valid_len, TL):
    # TODO(synk): dropout layers are identity here (inference semantics);
    # training-mode dropout / batch-statistic BatchNorm are not implemented.
    w1, s1 = fold_weightnorm_conv_bn(p["conv1_v"], p["conv1_g"], p["conv1_b"],
                                     p["bn1_gamma"], p["bn1_beta"],
                                     p["bn1_mean"], p["bn1_var"])
    w2, s2 = fold_weightnorm_conv_bn(p["conv2_v"], p["conv2_g"], p["conv2_b"],
                                     p["bn2_gamma"], p["bn2_beta"],
                                     p["bn2_mean"], p["bn2_var"])
    if not use_se:
        return temporal_block_fused(x, w1, s1, w2, s2, dilation, TL,
                                    fuse_residual=True,
                                    down_w=p["down_w"], down_b=p["down_b"])
    # SE: block kernel also emits the masked partial time-sum of h2 (squeeze);
    # the two tiny FC matmuls run in plain JAX; gate applied by a second kernel.
    h2, ssum = temporal_block_fused(x, w1, s1, w2, s2, dilation, TL,
                                    fuse_residual=False, emit_sum=True,
                                    valid_len=valid_len)
    mean = ssum[:, :, 0] / float(valid_len)                    # (B, C) f32
    a = jnp.maximum(jnp.dot(mean, p["se_w1"].T), 0.0)
    gate = jax.nn.sigmoid(jnp.dot(a, p["se_w2"].T))            # (B, C)
    return se_scale_residual(h2, gate, x, p["down_w"], p["down_b"], TL)


def tcn_forward(x, params, use_se=False, compute_dtype=jnp.bfloat16,
                tl_max=_TL_MAX):
    """x: (B, num_inputs, L) -> (B, num_channels[-1], L).

    Activations live in `compute_dtype` (bf16 by default) with f32 MXU
    accumulation; the input is padded ONCE to a tile multiple and every block
    output keeps that padded length (the garbage tail never contaminates the
    valid region because the convolutions are causal)."""
    B, _, L = x.shape
    K = params[0]["conv1_v"].shape[-1]
    max_P = (K - 1) * (2 ** (len(params) - 1))

    TL = _round_up(min(int(tl_max), _round_up(L, _LANE)), _LANE)
    if max_P > 0:
        TL = max(TL, _round_up(max_P, _LANE))   # halo must fit in one tile
    n_l = _cdiv(L, TL)
    Lp = n_l * TL

    h = x.astype(compute_dtype)
    if Lp != L:
        h = jnp.pad(h, ((0, 0), (0, 0), (0, Lp - L)))
    for i, p in enumerate(params):
        h = temporal_block_forward(h, p, 2 ** i, use_se, L, TL)
    return h[:, :, :L].astype(x.dtype)


# ---------------------------------------------------------------------------
# pure-JAX reference (mirrors the PyTorch forward at eval time)
# ---------------------------------------------------------------------------
def _causal_conv_ref(x, w_eff, shift, dilation):
    C_out, _, K = w_eff.shape
    L = x.shape[-1]
    P = (K - 1) * dilation
    xp = jnp.pad(x, ((0, 0), (0, 0), (P, 0)))
    out = shift[None, :, None]
    for k in range(K):
        out = out + jnp.einsum("oi,bil->bol", w_eff[:, :, k],
                               xp[:, :, k * dilation:k * dilation + L],
                               precision=_HI)
    return out


def temporal_block_ref(x, p, dilation, use_se):
    w1, s1 = fold_weightnorm_conv_bn(p["conv1_v"], p["conv1_g"], p["conv1_b"],
                                     p["bn1_gamma"], p["bn1_beta"],
                                     p["bn1_mean"], p["bn1_var"])
    h1 = jnp.maximum(_causal_conv_ref(x, w1, s1, dilation), 0.0)
    w2, s2 = fold_weightnorm_conv_bn(p["conv2_v"], p["conv2_g"], p["conv2_b"],
                                     p["bn2_gamma"], p["bn2_beta"],
                                     p["bn2_mean"], p["bn2_var"])
    h2 = jnp.maximum(_causal_conv_ref(h1, w2, s2, dilation), 0.0)
    if use_se:
        h2 = h2 * se_gate(h2, p["se_w1"], p["se_w2"])[:, :, None]
    if p["down_w"] is not None:
        res = jnp.einsum("oi,bil->bol", p["down_w"], x,
                         precision=_HI) + p["down_b"][None, :, None]
    else:
        res = x
    return jnp.maximum(h2 + res, 0.0)


def tcn_ref(x, params, use_se=False):
    h = x
    for i, p in enumerate(params):
        h = temporal_block_ref(h, p, 2 ** i, use_se)
    return h


# ---------------------------------------------------------------------------
# deterministic parameter construction
# ---------------------------------------------------------------------------
def init_block_params(key, c_in, c_out, kernel_size, use_se, reduction=16):
    ks = jax.random.split(key, 18)
    f32 = jnp.float32
    std1 = math.sqrt(2.0 / (c_in * kernel_size))
    std2 = math.sqrt(2.0 / (c_out * kernel_size))
    p = {
        "conv1_v": std1 * jax.random.normal(ks[0], (c_out, c_in, kernel_size), f32),
        "conv1_g": 1.0 + 0.1 * jax.random.normal(ks[1], (c_out, 1, 1), f32),
        "conv1_b": 0.1 * jax.random.normal(ks[2], (c_out,), f32),
        "bn1_gamma": 1.0 + 0.1 * jax.random.normal(ks[3], (c_out,), f32),
        "bn1_beta": 0.1 * jax.random.normal(ks[4], (c_out,), f32),
        "bn1_mean": 0.1 * jax.random.normal(ks[5], (c_out,), f32),
        "bn1_var": 1.0 + 0.1 * jnp.abs(jax.random.normal(ks[6], (c_out,), f32)),
        "conv2_v": std2 * jax.random.normal(ks[7], (c_out, c_out, kernel_size), f32),
        "conv2_g": 1.0 + 0.1 * jax.random.normal(ks[8], (c_out, 1, 1), f32),
        "conv2_b": 0.1 * jax.random.normal(ks[9], (c_out,), f32),
        "bn2_gamma": 1.0 + 0.1 * jax.random.normal(ks[10], (c_out,), f32),
        "bn2_beta": 0.1 * jax.random.normal(ks[11], (c_out,), f32),
        "bn2_mean": 0.1 * jax.random.normal(ks[12], (c_out,), f32),
        "bn2_var": 1.0 + 0.1 * jnp.abs(jax.random.normal(ks[13], (c_out,), f32)),
        "down_w": None,
        "down_b": None,
    }
    if c_in != c_out:
        p["down_w"] = math.sqrt(2.0 / c_in) * jax.random.normal(ks[14], (c_out, c_in), f32)
        p["down_b"] = 0.1 * jax.random.normal(ks[15], (c_out,), f32)
    if use_se:
        hdim = max(c_out // reduction, 1)
        p["se_w1"] = math.sqrt(2.0 / c_out) * jax.random.normal(ks[16], (hdim, c_out), f32)
        p["se_w2"] = math.sqrt(2.0 / hdim) * jax.random.normal(ks[17], (c_out, hdim), f32)
    return p


def init_tcn_params(key, num_inputs, num_channels, kernel_size=2, use_se=False,
                    reduction=16):
    params = []
    c_in = num_inputs
    for c_out in num_channels:
        key, sub = jax.random.split(key)
        params.append(init_block_params(sub, c_in, c_out, kernel_size, use_se,
                                        reduction))
        c_in = c_out
    return params


# ---------------------------------------------------------------------------
# self-test
# ---------------------------------------------------------------------------
if __name__ == "__main__":
    def check(name, num_inputs, num_channels, L, use_se, key, *,
              compute_dtype=jnp.float32, tol=2e-2, tl_max=_TL_MAX, batch=2):
        kp, kx = jax.random.split(key)
        params = init_tcn_params(kp, num_inputs, num_channels,
                                 kernel_size=2, use_se=use_se)
        x = jax.random.normal(kx, (batch, num_inputs, L), jnp.float32)

        fwd = jax.jit(lambda a: tcn_forward(a, params, use_se=use_se,
                                            compute_dtype=compute_dtype,
                                            tl_max=tl_max))
        out = jax.block_until_ready(fwd(x))
        ref = jax.block_until_ready(tcn_ref(x, params, use_se=use_se))

        assert out.shape == (batch, num_channels[-1], L), (name, out.shape)
        scale = 1.0 + float(jnp.max(jnp.abs(ref)))
        max_err = float(jnp.max(jnp.abs(out.astype(jnp.float32) - ref)))
        assert max_err <= tol * scale, f"{name}: max_err={max_err} scale={scale}"

    key = jax.random.PRNGKey(0)
    k1, k2, k3, k4 = jax.random.split(key, 4)

    # Module defaults (kernel_size=2, use_se=False); exercises both downsample
    # (3->8, 8->16) and identity (8->8) residuals, single time tile.
    check("tcn_small", num_inputs=3, num_channels=[8, 8, 16], L=16,
          use_se=False, key=k1, compute_dtype=jnp.float32, tol=2e-2)
    # Multi-tile path: small tl_max forces n_l=3 tiles -> exercises the
    # carried x/h1 history across tile boundaries.
    check("tcn_multitile", num_inputs=4, num_channels=[8, 8], L=640,
          use_se=False, key=k2, compute_dtype=jnp.float32, tol=2e-2,
          tl_max=256)
    # bf16 activation path (default dtype) with multi-tile carry + downsample.
    check("tcn_bf16", num_inputs=3, num_channels=[8, 16], L=192,
          use_se=False, key=k3, compute_dtype=jnp.bfloat16, tol=6e-2,
          tl_max=128)
    # SE-enabled variant (channels >= reduction=16), bf16, fused squeeze sum.
    check("tcn_se", num_inputs=8, num_channels=[16, 16], L=24,
          use_se=True, key=k4, compute_dtype=jnp.bfloat16, tol=6e-2)

    print("KERNEL_OK")
</pallas_src>

<mosaic_0001>
module attributes {stable_mosaic.version = 11 : i64} {
  func.func @kernel(%arg0: i32, %arg1: i32, %arg2: memref<1x3x128xf32, #tpu.memory_space<vmem>>, %arg3: memref<2x8x3xf32, #tpu.memory_space<vmem>>, %arg4: memref<8x1xf32, #tpu.memory_space<vmem>>, %arg5: memref<2x8x8xf32, #tpu.memory_space<vmem>>, %arg6: memref<8x1xf32, #tpu.memory_space<vmem>>, %arg7: memref<8x3xf32, #tpu.memory_space<vmem>>, %arg8: memref<8x1xf32, #tpu.memory_space<vmem>>, %arg9: memref<1x8x128xf32, #tpu.memory_space<vmem>>, %arg10: memref<3x256xf32, #tpu.memory_space<vmem>>, %arg11: memref<8x256xf32, #tpu.memory_space<vmem>>) attributes {dimension_semantics = [#tpu.dimension_semantics<parallel>, #tpu.dimension_semantics<arbitrary>], iteration_bounds = array<i64: 2, 1>, scalar_prefetch = 0 : i64, scratch_operands = 2 : i64, tpu.core_type = #tpu.core_type<tc>, window_params = [{transform_indices = @transform_0, window_bounds = array<i64: 1, 3, 128>}, {pipeline_mode = #tpu.pipeline_mode<synchronous>, transform_indices = @transform_1, window_bounds = array<i64: 2, 8, 3>}, {pipeline_mode = #tpu.pipeline_mode<synchronous>, transform_indices = @transform_2, window_bounds = array<i64: 8, 1>}, {pipeline_mode = #tpu.pipeline_mode<synchronous>, transform_indices = @transform_3, window_bounds = array<i64: 2, 8, 8>}, {pipeline_mode = #tpu.pipeline_mode<synchronous>, transform_indices = @transform_4, window_bounds = array<i64: 8, 1>}, {pipeline_mode = #tpu.pipeline_mode<synchronous>, transform_indices = @transform_5, window_bounds = array<i64: 8, 3>}, {pipeline_mode = #tpu.pipeline_mode<synchronous>, transform_indices = @transform_6, window_bounds = array<i64: 8, 1>}, {transform_indices = @transform_7, window_bounds = array<i64: 1, 8, 128>}]} {
    %c0_i32 = arith.constant 0 : i32
    %0 = arith.cmpi eq, %arg1, %c0_i32 : i32
    %1 = arith.extui %0 : i1 to i32
    %c0_i32_0 = arith.constant 0 : i32
    %2 = arith.cmpi ne, %1, %c0_i32_0 : i32
    scf.if %2 {
      %cst_44 = arith.constant 0.000000e+00 : f32
      %49 = vector.broadcast %cst_44 : f32 to vector<3x128xf32>
      %c0_45 = arith.constant 0 : index
      %c0_46 = arith.constant 0 : index
      %50 = vector.load %arg10[%c0_45, %c0_46] : memref<3x256xf32, #tpu.memory_space<vmem>>, vector<3x128xf32>
      tpu.vector_store %arg10[%c0_45, %c0_46], %49 {strides = array<i32>} : memref<3x256xf32, #tpu.memory_space<vmem>>, vector<3x128xf32>,
      %cst_47 = arith.constant 0.000000e+00 : f32
      %51 = vector.broadcast %cst_47 : f32 to vector<8x128xf32>
      %c0_48 = arith.constant 0 : index
      %c0_49 = arith.constant 0 : index
      %52 = vector.load %arg11[%c0_48, %c0_49] : memref<8x256xf32, #tpu.memory_space<vmem>>, vector<8x128xf32>
      tpu.vector_store %arg11[%c0_48, %c0_49], %51 {strides = array<i32>} : memref<8x256xf32, #tpu.memory_space<vmem>>, vector<8x128xf32>,
    } else {
    }
    %c0_i32_1 = arith.constant 0 : i32
    %3 = arith.cmpi sgt, %arg1, %c0_i32_1 : i32
    %4 = arith.extui %3 : i1 to i32
    %c0_i32_2 = arith.constant 0 : i32
    %5 = arith.cmpi ne, %4, %c0_i32_2 : i32
    scf.if %5 {
      %c0_44 = arith.constant 0 : index
      %c128_45 = arith.constant 128 : index
      %49 = vector.load %arg10[%c0_44, %c128_45] : memref<3x256xf32, #tpu.memory_space<vmem>>, vector<3x128xf32>
      %c0_46 = arith.constant 0 : index
      %c0_47 = arith.constant 0 : index
      %50 = vector.load %arg10[%c0_46, %c0_47] : memref<3x256xf32, #tpu.memory_space<vmem>>, vector<3x128xf32>
      tpu.vector_store %arg10[%c0_46, %c0_47], %49 {strides = array<i32>} : memref<3x256xf32, #tpu.memory_space<vmem>>, vector<3x128xf32>,
      %c0_48 = arith.constant 0 : index
      %c128_49 = arith.constant 128 : index
      %51 = vector.load %arg11[%c0_48, %c128_49] : memref<8x256xf32, #tpu.memory_space<vmem>>, vector<8x128xf32>
      %c0_50 = arith.constant 0 : index
      %c0_51 = arith.constant 0 : index
      %52 = vector.load %arg11[%c0_50, %c0_51] : memref<8x256xf32, #tpu.memory_space<vmem>>, vector<8x128xf32>
      tpu.vector_store %arg11[%c0_50, %c0_51], %51 {strides = array<i32>} : memref<8x256xf32, #tpu.memory_space<vmem>>, vector<8x128xf32>,
    } else {
    }
    %c0 = arith.constant 0 : index
    %c0_3 = arith.constant 0 : index
    %c0_4 = arith.constant 0 : index
    %6 = vector.load %arg2[%c0, %c0_3, %c0_4] : memref<1x3x128xf32, #tpu.memory_space<vmem>>, vector<1x3x128xf32>
    %7 = vector.shape_cast %6 : vector<1x3x128xf32> to vector<3x128xf32>
    %c0_5 = arith.constant 0 : index
    %c128 = arith.constant 128 : index
    %8 = vector.load %arg10[%c0_5, %c128] : memref<3x256xf32, #tpu.memory_space<vmem>>, vector<3x128xf32>
    tpu.vector_store %arg10[%c0_5, %c128], %7 {strides = array<i32>} : memref<3x256xf32, #tpu.memory_space<vmem>>, vector<3x128xf32>,
    %c0_6 = arith.constant 0 : index
    %c0_7 = arith.constant 0 : index
    %c0_8 = arith.constant 0 : index
    %9 = vector.load %arg3[%c0_6, %c0_7, %c0_8] : memref<2x8x3xf32, #tpu.memory_space<vmem>>, vector<1x8x3xf32>
    %10 = vector.shape_cast %9 : vector<1x8x3xf32> to vector<8x3xf32>
    %c0_9 = arith.constant 0 : index
    %c127 = arith.constant 127 : index
    %11 = vector.load %arg10[%c0_9, %c127] : memref<3x256xf32, #tpu.memory_space<vmem>>, vector<3x128xf32>
    %cst = arith.constant dense<0.000000e+00> : vector<8x128xf32>
    %12 = tpu.matmul %10, %11, %cst {dimension_numbers = #tpu.dot_dimension_numbers<[1], [0], [0], [1], [0, 0, 1, 1], [], []>, precision = #tpu.contract_precision<fp32>} : vector<8x3xf32>, vector<3x128xf32>, vector<8x128xf32> -> vector<8x128xf32>
    %c1 = arith.constant 1 : index
    %c0_10 = arith.constant 0 : index
    %c0_11 = arith.constant 0 : index
    %13 = vector.load %arg3[%c1, %c0_10, %c0_11] : memref<2x8x3xf32, #tpu.memory_space<vmem>>, vector<1x8x3xf32>
    %14 = vector.shape_cast %13 : vector<1x8x3xf32> to vector<8x3xf32>
    %c0_12 = arith.constant 0 : index
    %c128_13 = arith.constant 128 : index
    %15 = vector.load %arg10[%c0_12, %c128_13] : memref<3x256xf32, #tpu.memory_space<vmem>>, vector<3x128xf32>
    %cst_14 = arith.constant dense<0.000000e+00> : vector<8x128xf32>
    %16 = tpu.matmul %14, %15, %cst_14 {dimension_numbers = #tpu.dot_dimension_numbers<[1], [0], [0], [1], [0, 0, 1, 1], [], []>, precision = #tpu.contract_precision<fp32>} : vector<8x3xf32>, vector<3x128xf32>, vector<8x128xf32> -> vector<8x128xf32>
    %17 = arith.addf %12, %16 : vector<8x128xf32>
    %c0_15 = arith.constant 0 : index
    %c0_16 = arith.constant 0 : index
    %18 = vector.load %arg4[%c0_15, %c0_16] : memref<8x1xf32, #tpu.memory_space<vmem>>, vector<8x1xf32>
    %19 = vector.broadcast %18 : vector<8x1xf32> to vector<8x128xf32>
    %20 = arith.addf %17, %19 : vector<8x128xf32>
    %cst_17 = arith.constant 0.000000e+00 : f32
    %21 = vector.broadcast %cst_17 : f32 to vector<8x128xf32>
    %22 = arith.maximumf %20, %21 : vector<8x128xf32>
    %c0_18 = arith.constant 0 : index
    %c128_19 = arith.constant 128 : index
    %23 = vector.load %arg11[%c0_18, %c128_19] : memref<8x256xf32, #tpu.memory_space<vmem>>, vector<8x128xf32>
    tpu.vector_store %arg11[%c0_18, %c128_19], %22 {strides = array<i32>} : memref<8x256xf32, #tpu.memory_space<vmem>>, vector<8x128xf32>,
    %c0_20 = arith.constant 0 : index
    %c0_21 = arith.constant 0 : index
    %c0_22 = arith.constant 0 : index
    %24 = vector.load %arg5[%c0_20, %c0_21, %c0_22] : memref<2x8x8xf32, #tpu.memory_space<vmem>>, vector<1x8x8xf32>
    %25 = vector.shape_cast %24 : vector<1x8x8xf32> to vector<8x8xf32>
    %c0_23 = arith.constant 0 : index
    %c127_24 = arith.constant 127 : index
    %26 = vector.load %arg11[%c0_23, %c127_24] : memref<8x256xf32, #tpu.memory_space<vmem>>, vector<8x128xf32>
    %cst_25 = arith.constant dense<0.000000e+00> : vector<8x128xf32>
    %27 = tpu.matmul %25, %26, %cst_25 {dimension_numbers = #tpu.dot_dimension_numbers<[1], [0], [0], [1], [0, 0, 1, 1], [], []>, precision = #tpu.contract_precision<fp32>} : vector<8x8xf32>, vector<8x128xf32>, vector<8x128xf32> -> vector<8x128xf32>
    %c1_26 = arith.constant 1 : index
    %c0_27 = arith.constant 0 : index
    %c0_28 = arith.constant 0 : index
    %28 = vector.load %arg5[%c1_26, %c0_27, %c0_28] : memref<2x8x8xf32, #tpu.memory_space<vmem>>, vector<1x8x8xf32>
    %29 = vector.shape_cast %28 : vector<1x8x8xf32> to vector<8x8xf32>
    %c0_29 = arith.constant 0 : index
    %c128_30 = arith.constant 128 : index
    %30 = vector.load %arg11[%c0_29, %c128_30] : memref<8x256xf32, #tpu.memory_space<vmem>>, vector<8x128xf32>
    %cst_31 = arith.constant dense<0.000000e+00> : vector<8x128xf32>
    %31 = tpu.matmul %29, %30, %cst_31 {dimension_numbers = #tpu.dot_dimension_numbers<[1], [0], [0], [1], [0, 0, 1, 1], [], []>, precision = #tpu.contract_precision<fp32>} : vector<8x8xf32>, vector<8x128xf32>, vector<8x128xf32> -> vector<8x128xf32>
    %32 = arith.addf %27, %31 : vector<8x128xf32>
    %c0_32 = arith.constant 0 : index
    %c0_33 = arith.constant 0 : index
    %33 = vector.load %arg6[%c0_32, %c0_33] : memref<8x1xf32, #tpu.memory_space<vmem>>, vector<8x1xf32>
    %34 = vector.broadcast %33 : vector<8x1xf32> to vector<8x128xf32>
    %35 = arith.addf %32, %34 : vector<8x128xf32>
    %cst_34 = arith.constant 0.000000e+00 : f32
    %36 = vector.broadcast %cst_34 : f32 to vector<8x128xf32>
    %37 = arith.maximumf %35, %36 : vector<8x128xf32>
    %c0_35 = arith.constant 0 : index
    %c0_36 = arith.constant 0 : index
    %38 = vector.load %arg7[%c0_35, %c0_36] : memref<8x3xf32, #tpu.memory_space<vmem>>, vector<8x3xf32>
    %cst_37 = arith.constant dense<0.000000e+00> : vector<8x128xf32>
    %39 = tpu.matmul %38, %7, %cst_37 {dimension_numbers = #tpu.dot_dimension_numbers<[1], [0], [0], [1], [0, 0, 1, 1], [], []>, precision = #tpu.contract_precision<fp32>} : vector<8x3xf32>, vector<3x128xf32>, vector<8x128xf32> -> vector<8x128xf32>
    %c0_38 = arith.constant 0 : index
    %c0_39 = arith.constant 0 : index
    %40 = vector.load %arg8[%c0_38, %c0_39] : memref<8x1xf32, #tpu.memory_space<vmem>>, vector<8x1xf32>
    %41 = vector.broadcast %40 : vector<8x1xf32> to vector<8x128xf32>
    %42 = arith.addf %39, %41 : vector<8x128xf32>
    %43 = arith.addf %37, %42 : vector<8x128xf32>
    %cst_40 = arith.constant 0.000000e+00 : f32
    %44 = vector.broadcast %cst_40 : f32 to vector<8x128xf32>
    %45 = arith.maximumf %43, %44 : vector<8x128xf32>
    %c0_41 = arith.constant 0 : index
    %c0_42 = arith.constant 0 : index
    %c0_43 = arith.constant 0 : index
    %46 = vector.load %arg9[%c0_41, %c0_42, %c0_43] : memref<1x8x128xf32, #tpu.memory_space<vmem>>, vector<1x8x128xf32>
    %47 = vector.shape_cast %46 : vector<1x8x128xf32> to vector<8x128xf32>
    %48 = vector.shape_cast %45 : vector<8x128xf32> to vector<1x8x128xf32>
    tpu.vector_store %arg9[%c0_41, %c0_42, %c0_43], %48 {strides = array<i32>} : memref<1x8x128xf32, #tpu.memory_space<vmem>>, vector<1x8x128xf32>,
    return
  }
  func.func @transform_0(%arg0: i32, %arg1: i32) -> (i32, i32, i32) {
    %c0_i32 = arith.constant 0 : i32
    %c0_i32_0 = arith.constant 0 : i32
    return %arg0, %c0_i32, %arg1 : i32, i32, i32
  }
  func.func @transform_1(%arg0: i32, %arg1: i32) -> (i32, i32, i32) {
    %c0_i32 = arith.constant 0 : i32
    %c0_i32_0 = arith.constant 0 : i32
    %c0_i32_1 = arith.constant 0 : i32
    %c0_i32_2 = arith.constant 0 : i32
    return %c0_i32, %c0_i32_0, %c0_i32_1 : i32, i32, i32
  }
  func.func @transform_2(%arg0: i32, %arg1: i32) -> (i32, i32) {
    %c0_i32 = arith.constant 0 : i32
    %c0_i32_0 = arith.constant 0 : i32
    %c0_i32_1 = arith.constant 0 : i32
    return %c0_i32, %c0_i32_0 : i32, i32
  }
  func.func @transform_3(%arg0: i32, %arg1: i32) -> (i32, i32, i32) {
    %c0_i32 = arith.constant 0 : i32
    %c0_i32_0 = arith.constant 0 : i32
    %c0_i32_1 = arith.constant 0 : i32
    %c0_i32_2 = arith.constant 0 : i32
    return %c0_i32, %c0_i32_0, %c0_i32_1 : i32, i32, i32
  }
  func.func @transform_4(%arg0: i32, %arg1: i32) -> (i32, i32) {
    %c0_i32 = arith.constant 0 : i32
    %c0_i32_0 = arith.constant 0 : i32
    %c0_i32_1 = arith.constant 0 : i32
    return %c0_i32, %c0_i32_0 : i32, i32
  }
  func.func @transform_5(%arg0: i32, %arg1: i32) -> (i32, i32) {
    %c0_i32 = arith.constant 0 : i32
    %c0_i32_0 = arith.constant 0 : i32
    %c0_i32_1 = arith.constant 0 : i32
    return %c0_i32, %c0_i32_0 : i32, i32
  }
  func.func @transform_6(%arg0: i32, %arg1: i32) -> (i32, i32) {
    %c0_i32 = arith.constant 0 : i32
    %c0_i32_0 = arith.constant 0 : i32
    %c0_i32_1 = arith.constant 0 : i32
    return %c0_i32, %c0_i32_0 : i32, i32
  }
  func.func @transform_7(%arg0: i32, %arg1: i32) -> (i32, i32, i32) {
    %c0_i32 = arith.constant 0 : i32
    %c0_i32_0 = arith.constant 0 : i32
    return %arg0, %c0_i32, %arg1 : i32, i32, i32
  }
}

module attributes {stable_mosaic.version = 11 : i64} {
  func.func @kernel(%arg0: i32, %arg1: i32, %arg2: memref<1x8x128xf32, #tpu.memory_space<vmem>>, %arg3: memref<2x8x8xf32, #tpu.memory_space<vmem>>, %arg4: memref<8x1xf32, #tpu.memory_space<vmem>>, %arg5: memref<2x8x8xf32, #tpu.memory_space<vmem>>, %arg6: memref<8x1xf32, #tpu.memory_space<vmem>>, %arg7: memref<1x8x128xf32, #tpu.memory_space<vmem>>, %arg8: memref<8x256xf32, #tpu.memory_space<vmem>>, %arg9: memref<8x256xf32, #tpu.memory_space<vmem>>) attributes {dimension_semantics = [#tpu.dimension_semantics<parallel>, #tpu.dimension_semantics<arbitrary>], iteration_bounds = array<i64: 2, 1>, scalar_prefetch = 0 : i64, scratch_operands = 2 : i64, tpu.core_type = #tpu.core_type<tc>, window_params = [{transform_indices = @transform_0, window_bounds = array<i64: 1, 8, 128>}, {pipeline_mode = #tpu.pipeline_mode<synchronous>, transform_indices = @transform_1, window_bounds = array<i64: 2, 8, 8>}, {pipeline_mode = #tpu.pipeline_mode<synchronous>, transform_indices = @transform_2, window_bounds = array<i64: 8, 1>}, {pipeline_mode = #tpu.pipeline_mode<synchronous>, transform_indices = @transform_3, window_bounds = array<i64: 2, 8, 8>}, {pipeline_mode = #tpu.pipeline_mode<synchronous>, transform_indices = @transform_4, window_bounds = array<i64: 8, 1>}, {transform_indices = @transform_5, window_bounds = array<i64: 1, 8, 128>}]} {
    %c0_i32 = arith.constant 0 : i32
    %0 = arith.cmpi eq, %arg1, %c0_i32 : i32
    %1 = arith.extui %0 : i1 to i32
    %c0_i32_0 = arith.constant 0 : i32
    %2 = arith.cmpi ne, %1, %c0_i32_0 : i32
    scf.if %2 {
      %cst_39 = arith.constant 0.000000e+00 : f32
      %44 = vector.broadcast %cst_39 : f32 to vector<8x128xf32>
      %c0_40 = arith.constant 0 : index
      %c0_41 = arith.constant 0 : index
      %45 = vector.load %arg8[%c0_40, %c0_41] : memref<8x256xf32, #tpu.memory_space<vmem>>, vector<8x128xf32>
      tpu.vector_store %arg8[%c0_40, %c0_41], %44 {strides = array<i32>} : memref<8x256xf32, #tpu.memory_space<vmem>>, vector<8x128xf32>,
      %cst_42 = arith.constant 0.000000e+00 : f32
      %46 = vector.broadcast %cst_42 : f32 to vector<8x128xf32>
      %c0_43 = arith.constant 0 : index
      %c0_44 = arith.constant 0 : index
      %47 = vector.load %arg9[%c0_43, %c0_44] : memref<8x256xf32, #tpu.memory_space<vmem>>, vector<8x128xf32>
      tpu.vector_store %arg9[%c0_43, %c0_44], %46 {strides = array<i32>} : memref<8x256xf32, #tpu.memory_space<vmem>>, vector<8x128xf32>,
    } else {
    }
    %c0_i32_1 = arith.constant 0 : i32
    %3 = arith.cmpi sgt, %arg1, %c0_i32_1 : i32
    %4 = arith.extui %3 : i1 to i32
    %c0_i32_2 = arith.constant 0 : i32
    %5 = arith.cmpi ne, %4, %c0_i32_2 : i32
    scf.if %5 {
      %c0_39 = arith.constant 0 : index
      %c128_40 = arith.constant 128 : index
      %44 = vector.load %arg8[%c0_39, %c128_40] : memref<8x256xf32, #tpu.memory_space<vmem>>, vector<8x128xf32>
      %c0_41 = arith.constant 0 : index
      %c0_42 = arith.constant 0 : index
      %45 = vector.load %arg8[%c0_41, %c0_42] : memref<8x256xf32, #tpu.memory_space<vmem>>, vector<8x128xf32>
      tpu.vector_store %arg8[%c0_41, %c0_42], %44 {strides = array<i32>} : memref<8x256xf32, #tpu.memory_space<vmem>>, vector<8x128xf32>,
      %c0_43 = arith.constant 0 : index
      %c128_44 = arith.constant 128 : index
      %46 = vector.load %arg9[%c0_43, %c128_44] : memref<8x256xf32, #tpu.memory_space<vmem>>, vector<8x128xf32>
      %c0_45 = arith.constant 0 : index
      %c0_46 = arith.constant 0 : index
      %47 = vector.load %arg9[%c0_45, %c0_46] : memref<8x256xf32, #tpu.memory_space<vmem>>, vector<8x128xf32>
      tpu.vector_store %arg9[%c0_45, %c0_46], %46 {strides = array<i32>} : memref<8x256xf32, #tpu.memory_space<vmem>>, vector<8x128xf32>,
    } else {
    }
    %c0 = arith.constant 0 : index
    %c0_3 = arith.constant 0 : index
    %c0_4 = arith.constant 0 : index
    %6 = vector.load %arg2[%c0, %c0_3, %c0_4] : memref<1x8x128xf32, #tpu.memory_space<vmem>>, vector<1x8x128xf32>
    %7 = vector.shape_cast %6 : vector<1x8x128xf32> to vector<8x128xf32>
    %c0_5 = arith.constant 0 : index
    %c128 = arith.constant 128 : index
    %8 = vector.load %arg8[%c0_5, %c128] : memref<8x256xf32, #tpu.memory_space<vmem>>, vector<8x128xf32>
    tpu.vector_store %arg8[%c0_5, %c128], %7 {strides = array<i32>} : memref<8x256xf32, #tpu.memory_space<vmem>>, vector<8x128xf32>,
    %c0_6 = arith.constant 0 : index
    %c0_7 = arith.constant 0 : index
    %c0_8 = arith.constant 0 : index
    %9 = vector.load %arg3[%c0_6, %c0_7, %c0_8] : memref<2x8x8xf32, #tpu.memory_space<vmem>>, vector<1x8x8xf32>
    %10 = vector.shape_cast %9 : vector<1x8x8xf32> to vector<8x8xf32>
    %c0_9 = arith.constant 0 : index
    %c126 = arith.constant 126 : index
    %11 = vector.load %arg8[%c0_9, %c126] : memref<8x256xf32, #tpu.memory_space<vmem>>, vector<8x128xf32>
    %cst = arith.constant dense<0.000000e+00> : vector<8x128xf32>
    %12 = tpu.matmul %10, %11, %cst {dimension_numbers = #tpu.dot_dimension_numbers<[1], [0], [0], [1], [0, 0, 1, 1], [], []>, precision = #tpu.contract_precision<fp32>} : vector<8x8xf32>, vector<8x128xf32>, vector<8x128xf32> -> vector<8x128xf32>
    %c1 = arith.constant 1 : index
    %c0_10 = arith.constant 0 : index
    %c0_11 = arith.constant 0 : index
    %13 = vector.load %arg3[%c1, %c0_10, %c0_11] : memref<2x8x8xf32, #tpu.memory_space<vmem>>, vector<1x8x8xf32>
    %14 = vector.shape_cast %13 : vector<1x8x8xf32> to vector<8x8xf32>
    %c0_12 = arith.constant 0 : index
    %c128_13 = arith.constant 128 : index
    %15 = vector.load %arg8[%c0_12, %c128_13] : memref<8x256xf32, #tpu.memory_space<vmem>>, vector<8x128xf32>
    %cst_14 = arith.constant dense<0.000000e+00> : vector<8x128xf32>
    %16 = tpu.matmul %14, %15, %cst_14 {dimension_numbers = #tpu.dot_dimension_numbers<[1], [0], [0], [1], [0, 0, 1, 1], [], []>, precision = #tpu.contract_precision<fp32>} : vector<8x8xf32>, vector<8x128xf32>, vector<8x128xf32> -> vector<8x128xf32>
    %17 = arith.addf %12, %16 : vector<8x128xf32>
    %c0_15 = arith.constant 0 : index
    %c0_16 = arith.constant 0 : index
    %18 = vector.load %arg4[%c0_15, %c0_16] : memref<8x1xf32, #tpu.memory_space<vmem>>, vector<8x1xf32>
    %19 = vector.broadcast %18 : vector<8x1xf32> to vector<8x128xf32>
    %20 = arith.addf %17, %19 : vector<8x128xf32>
    %cst_17 = arith.constant 0.000000e+00 : f32
    %21 = vector.broadcast %cst_17 : f32 to vector<8x128xf32>
    %22 = arith.maximumf %20, %21 : vector<8x128xf32>
    %c0_18 = arith.constant 0 : index
    %c128_19 = arith.constant 128 : index
    %23 = vector.load %arg9[%c0_18, %c128_19] : memref<8x256xf32, #tpu.memory_space<vmem>>, vector<8x128xf32>
    tpu.vector_store %arg9[%c0_18, %c128_19], %22 {strides = array<i32>} : memref<8x256xf32, #tpu.memory_space<vmem>>, vector<8x128xf32>,
    %c0_20 = arith.constant 0 : index
    %c0_21 = arith.constant 0 : index
    %c0_22 = arith.constant 0 : index
    %24 = vector.load %arg5[%c0_20, %c0_21, %c0_22] : memref<2x8x8xf32, #tpu.memory_space<vmem>>, vector<1x8x8xf32>
    %25 = vector.shape_cast %24 : vector<1x8x8xf32> to vector<8x8xf32>
    %c0_23 = arith.constant 0 : index
    %c126_24 = arith.constant 126 : index
    %26 = vector.load %arg9[%c0_23, %c126_24] : memref<8x256xf32, #tpu.memory_space<vmem>>, vector<8x128xf32>
    %cst_25 = arith.constant dense<0.000000e+00> : vector<8x128xf32>
    %27 = tpu.matmul %25, %26, %cst_25 {dimension_numbers = #tpu.dot_dimension_numbers<[1], [0], [0], [1], [0, 0, 1, 1], [], []>, precision = #tpu.contract_precision<fp32>} : vector<8x8xf32>, vector<8x128xf32>, vector<8x128xf32> -> vector<8x128xf32>
    %c1_26 = arith.constant 1 : index
    %c0_27 = arith.constant 0 : index
    %c0_28 = arith.constant 0 : index
    %28 = vector.load %arg5[%c1_26, %c0_27, %c0_28] : memref<2x8x8xf32, #tpu.memory_space<vmem>>, vector<1x8x8xf32>
    %29 = vector.shape_cast %28 : vector<1x8x8xf32> to vector<8x8xf32>
    %c0_29 = arith.constant 0 : index
    %c128_30 = arith.constant 128 : index
    %30 = vector.load %arg9[%c0_29, %c128_30] : memref<8x256xf32, #tpu.memory_space<vmem>>, vector<8x128xf32>
    %cst_31 = arith.constant dense<0.000000e+00> : vector<8x128xf32>
    %31 = tpu.matmul %29, %30, %cst_31 {dimension_numbers = #tpu.dot_dimension_numbers<[1], [0], [0], [1], [0, 0, 1, 1], [], []>, precision = #tpu.contract_precision<fp32>} : vector<8x8xf32>, vector<8x128xf32>, vector<8x128xf32> -> vector<8x128xf32>
    %32 = arith.addf %27, %31 : vector<8x128xf32>
    %c0_32 = arith.constant 0 : index
    %c0_33 = arith.constant 0 : index
    %33 = vector.load %arg6[%c0_32, %c0_33] : memref<8x1xf32, #tpu.memory_space<vmem>>, vector<8x1xf32>
    %34 = vector.broadcast %33 : vector<8x1xf32> to vector<8x128xf32>
    %35 = arith.addf %32, %34 : vector<8x128xf32>
    %cst_34 = arith.constant 0.000000e+00 : f32
    %36 = vector.broadcast %cst_34 : f32 to vector<8x128xf32>
    %37 = arith.maximumf %35, %36 : vector<8x128xf32>
    %38 = arith.addf %37, %7 : vector<8x128xf32>
    %cst_35 = arith.constant 0.000000e+00 : f32
    %39 = vector.broadcast %cst_35 : f32 to vector<8x128xf32>
    %40 = arith.maximumf %38, %39 : vector<8x128xf32>
    %c0_36 = arith.constant 0 : index
    %c0_37 = arith.constant 0 : index
    %c0_38 = arith.constant 0 : index
    %41 = vector.load %arg7[%c0_36, %c0_37, %c0_38] : memref<1x8x128xf32, #tpu.memory_space<vmem>>, vector<1x8x128xf32>
    %42 = vector.shape_cast %41 : vector<1x8x128xf32> to vector<8x128xf32>
    %43 = vector.shape_cast %40 : vector<8x128xf32> to vector<1x8x128xf32>
    tpu.vector_store %arg7[%c0_36, %c0_37, %c0_38], %43 {strides = array<i32>} : memref<1x8x128xf32, #tpu.memory_space<vmem>>, vector<1x8x128xf32>,
    return
  }
  func.func @transform_0(%arg0: i32, %arg1: i32) -> (i32, i32, i32) {
    %c0_i32 = arith.constant 0 : i32
    %c0_i32_0 = arith.constant 0 : i32
    return %arg0, %c0_i32, %arg1 : i32, i32, i32
  }
  func.func @transform_1(%arg0: i32, %arg1: i32) -> (i32, i32, i32) {
    %c0_i32 = arith.constant 0 : i32
    %c0_i32_0 = arith.constant 0 : i32
    %c0_i32_1 = arith.constant 0 : i32
    %c0_i32_2 = arith.constant 0 : i32
    return %c0_i32, %c0_i32_0, %c0_i32_1 : i32, i32, i32
  }
  func.func @transform_2(%arg0: i32, %arg1: i32) -> (i32, i32) {
    %c0_i32 = arith.constant 0 : i32
    %c0_i32_0 = arith.constant 0 : i32
    %c0_i32_1 = arith.constant 0 : i32
    return %c0_i32, %c0_i32_0 : i32, i32
  }
  func.func @transform_3(%arg0: i32, %arg1: i32) -> (i32, i32, i32) {
    %c0_i32 = arith.constant 0 : i32
    %c0_i32_0 = arith.constant 0 : i32
    %c0_i32_1 = arith.constant 0 : i32
    %c0_i32_2 = arith.constant 0 : i32
    return %c0_i32, %c0_i32_0, %c0_i32_1 : i32, i32, i32
  }
  func.func @transform_4(%arg0: i32, %arg1: i32) -> (i32, i32) {
    %c0_i32 = arith.constant 0 : i32
    %c0_i32_0 = arith.constant 0 : i32
    %c0_i32_1 = arith.constant 0 : i32
    return %c0_i32, %c0_i32_0 : i32, i32
  }
  func.func @transform_5(%arg0: i32, %arg1: i32) -> (i32, i32, i32) {
    %c0_i32 = arith.constant 0 : i32
    %c0_i32_0 = arith.constant 0 : i32
    return %arg0, %c0_i32, %arg1 : i32, i32, i32
  }
}

module attributes {stable_mosaic.version = 11 : i64} {
  func.func @kernel(%arg0: i32, %arg1: i32, %arg2: memref<1x8x128xf32, #tpu.memory_space<vmem>>, %arg3: memref<2x16x8xf32, #tpu.memory_space<vmem>>, %arg4: memref<16x1xf32, #tpu.memory_space<vmem>>, %arg5: memref<2x16x16xf32, #tpu.memory_space<vmem>>, %arg6: memref<16x1xf32, #tpu.memory_space<vmem>>, %arg7: memref<16x8xf32, #tpu.memory_space<vmem>>, %arg8: memref<16x1xf32, #tpu.memory_space<vmem>>, %arg9: memref<1x16x128xf32, #tpu.memory_space<vmem>>, %arg10: memref<8x256xf32, #tpu.memory_space<vmem>>, %arg11: memref<16x256xf32, #tpu.memory_space<vmem>>) attributes {dimension_semantics = [#tpu.dimension_semantics<parallel>, #tpu.dimension_semantics<arbitrary>], iteration_bounds = array<i64: 2, 1>, scalar_prefetch = 0 : i64, scratch_operands = 2 : i64, tpu.core_type = #tpu.core_type<tc>, window_params = [{transform_indices = @transform_0, window_bounds = array<i64: 1, 8, 128>}, {pipeline_mode = #tpu.pipeline_mode<synchronous>, transform_indices = @transform_1, window_bounds = array<i64: 2, 16, 8>}, {pipeline_mode = #tpu.pipeline_mode<synchronous>, transform_indices = @transform_2, window_bounds = array<i64: 16, 1>}, {pipeline_mode = #tpu.pipeline_mode<synchronous>, transform_indices = @transform_3, window_bounds = array<i64: 2, 16, 16>}, {pipeline_mode = #tpu.pipeline_mode<synchronous>, transform_indices = @transform_4, window_bounds = array<i64: 16, 1>}, {pipeline_mode = #tpu.pipeline_mode<synchronous>, transform_indices = @transform_5, window_bounds = array<i64: 16, 8>}, {pipeline_mode = #tpu.pipeline_mode<synchronous>, transform_indices = @transform_6, window_bounds = array<i64: 16, 1>}, {transform_indices = @transform_7, window_bounds = array<i64: 1, 16, 128>}]} {
    %c0_i32 = arith.constant 0 : i32
    %0 = arith.cmpi eq, %arg1, %c0_i32 : i32
    %1 = arith.extui %0 : i1 to i32
    %c0_i32_0 = arith.constant 0 : i32
    %2 = arith.cmpi ne, %1, %c0_i32_0 : i32
    scf.if %2 {
      %cst_44 = arith.constant 0.000000e+00 : f32
      %49 = vector.broadcast %cst_44 : f32 to vector<8x128xf32>
      %c0_45 = arith.constant 0 : index
      %c0_46 = arith.constant 0 : index
      %50 = vector.load %arg10[%c0_45, %c0_46] : memref<8x256xf32, #tpu.memory_space<vmem>>, vector<8x128xf32>
      tpu.vector_store %arg10[%c0_45, %c0_46], %49 {strides = array<i32>} : memref<8x256xf32, #tpu.memory_space<vmem>>, vector<8x128xf32>,
      %cst_47 = arith.constant 0.000000e+00 : f32
      %51 = vector.broadcast %cst_47 : f32 to vector<16x128xf32>
      %c0_48 = arith.constant 0 : index
      %c0_49 = arith.constant 0 : index
      %52 = vector.load %arg11[%c0_48, %c0_49] : memref<16x256xf32, #tpu.memory_space<vmem>>, vector<16x128xf32>
      tpu.vector_store %arg11[%c0_48, %c0_49], %51 {strides = array<i32>} : memref<16x256xf32, #tpu.memory_space<vmem>>, vector<16x128xf32>,
    } else {
    }
    %c0_i32_1 = arith.constant 0 : i32
    %3 = arith.cmpi sgt, %arg1, %c0_i32_1 : i32
    %4 = arith.extui %3 : i1 to i32
    %c0_i32_2 = arith.constant 0 : i32
    %5 = arith.cmpi ne, %4, %c0_i32_2 : i32
    scf.if %5 {
      %c0_44 = arith.constant 0 : index
      %c128_45 = arith.constant 128 : index
      %49 = vector.load %arg10[%c0_44, %c128_45] : memref<8x256xf32, #tpu.memory_space<vmem>>, vector<8x128xf32>
      %c0_46 = arith.constant 0 : index
      %c0_47 = arith.constant 0 : index
      %50 = vector.load %arg10[%c0_46, %c0_47] : memref<8x256xf32, #tpu.memory_space<vmem>>, vector<8x128xf32>
      tpu.vector_store %arg10[%c0_46, %c0_47], %49 {strides = array<i32>} : memref<8x256xf32, #tpu.memory_space<vmem>>, vector<8x128xf32>,
      %c0_48 = arith.constant 0 : index
      %c128_49 = arith.constant 128 : index
      %51 = vector.load %arg11[%c0_48, %c128_49] : memref<16x256xf32, #tpu.memory_space<vmem>>, vector<16x128xf32>
      %c0_50 = arith.constant 0 : index
      %c0_51 = arith.constant 0 : index
      %52 = vector.load %arg11[%c0_50, %c0_51] : memref<16x256xf32, #tpu.memory_space<vmem>>, vector<16x128xf32>
      tpu.vector_store %arg11[%c0_50, %c0_51], %51 {strides = array<i32>} : memref<16x256xf32, #tpu.memory_space<vmem>>, vector<16x128xf32>,
    } else {
    }
    %c0 = arith.constant 0 : index
    %c0_3 = arith.constant 0 : index
    %c0_4 = arith.constant 0 : index
    %6 = vector.load %arg2[%c0, %c0_3, %c0_4] : memref<1x8x128xf32, #tpu.memory_space<vmem>>, vector<1x8x128xf32>
    %7 = vector.shape_cast %6 : vector<1x8x128xf32> to vector<8x128xf32>
    %c0_5 = arith.constant 0 : index
    %c128 = arith.constant 128 : index
    %8 = vector.load %arg10[%c0_5, %c128] : memref<8x256xf32, #tpu.memory_space<vmem>>, vector<8x128xf32>
    tpu.vector_store %arg10[%c0_5, %c128], %7 {strides = array<i32>} : memref<8x256xf32, #tpu.memory_space<vmem>>, vector<8x128xf32>,
    %c0_6 = arith.constant 0 : index
    %c0_7 = arith.constant 0 : index
    %c0_8 = arith.constant 0 : index
    %9 = vector.load %arg3[%c0_6, %c0_7, %c0_8] : memref<2x16x8xf32, #tpu.memory_space<vmem>>, vector<1x16x8xf32>
    %10 = vector.shape_cast %9 : vector<1x16x8xf32> to vector<16x8xf32>
    %c0_9 = arith.constant 0 : index
    %c124 = arith.constant 124 : index
    %11 = vector.load %arg10[%c0_9, %c124] : memref<8x256xf32, #tpu.memory_space<vmem>>, vector<8x128xf32>
    %cst = arith.constant dense<0.000000e+00> : vector<16x128xf32>
    %12 = tpu.matmul %10, %11, %cst {dimension_numbers = #tpu.dot_dimension_numbers<[1], [0], [0], [1], [0, 0, 1, 1], [], []>, precision = #tpu.contract_precision<fp32>} : vector<16x8xf32>, vector<8x128xf32>, vector<16x128xf32> -> vector<16x128xf32>
    %c1 = arith.constant 1 : index
    %c0_10 = arith.constant 0 : index
    %c0_11 = arith.constant 0 : index
    %13 = vector.load %arg3[%c1, %c0_10, %c0_11] : memref<2x16x8xf32, #tpu.memory_space<vmem>>, vector<1x16x8xf32>
    %14 = vector.shape_cast %13 : vector<1x16x8xf32> to vector<16x8xf32>
    %c0_12 = arith.constant 0 : index
    %c128_13 = arith.constant 128 : index
    %15 = vector.load %arg10[%c0_12, %c128_13] : memref<8x256xf32, #tpu.memory_space<vmem>>, vector<8x128xf32>
    %cst_14 = arith.constant dense<0.000000e+00> : vector<16x128xf32>
    %16 = tpu.matmul %14, %15, %cst_14 {dimension_numbers = #tpu.dot_dimension_numbers<[1], [0], [0], [1], [0, 0, 1, 1], [], []>, precision = #tpu.contract_precision<fp32>} : vector<16x8xf32>, vector<8x128xf32>, vector<16x128xf32> -> vector<16x128xf32>
    %17 = arith.addf %12, %16 : vector<16x128xf32>
    %c0_15 = arith.constant 0 : index
    %c0_16 = arith.constant 0 : index
    %18 = vector.load %arg4[%c0_15, %c0_16] : memref<16x1xf32, #tpu.memory_space<vmem>>, vector<16x1xf32>
    %19 = vector.broadcast %18 : vector<16x1xf32> to vector<16x128xf32>
    %20 = arith.addf %17, %19 : vector<16x128xf32>
    %cst_17 = arith.constant 0.000000e+00 : f32
    %21 = vector.broadcast %cst_17 : f32 to vector<16x128xf32>
    %22 = arith.maximumf %20, %21 : vector<16x128xf32>
    %c0_18 = arith.constant 0 : index
    %c128_19 = arith.constant 128 : index
    %23 = vector.load %arg11[%c0_18, %c128_19] : memref<16x256xf32, #tpu.memory_space<vmem>>, vector<16x128xf32>
    tpu.vector_store %arg11[%c0_18, %c128_19], %22 {strides = array<i32>} : memref<16x256xf32, #tpu.memory_space<vmem>>, vector<16x128xf32>,
    %c0_20 = arith.constant 0 : index
    %c0_21 = arith.constant 0 : index
    %c0_22 = arith.constant 0 : index
    %24 = vector.load %arg5[%c0_20, %c0_21, %c0_22] : memref<2x16x16xf32, #tpu.memory_space<vmem>>, vector<1x16x16xf32>
    %25 = vector.shape_cast %24 : vector<1x16x16xf32> to vector<16x16xf32>
    %c0_23 = arith.constant 0 : index
    %c124_24 = arith.constant 124 : index
    %26 = vector.load %arg11[%c0_23, %c124_24] : memref<16x256xf32, #tpu.memory_space<vmem>>, vector<16x128xf32>
    %cst_25 = arith.constant dense<0.000000e+00> : vector<16x128xf32>
    %27 = tpu.matmul %25, %26, %cst_25 {dimension_numbers = #tpu.dot_dimension_numbers<[1], [0], [0], [1], [0, 0, 1, 1], [], []>, precision = #tpu.contract_precision<fp32>} : vector<16x16xf32>, vector<16x128xf32>, vector<16x128xf32> -> vector<16x128xf32>
    %c1_26 = arith.constant 1 : index
    %c0_27 = arith.constant 0 : index
    %c0_28 = arith.constant 0 : index
    %28 = vector.load %arg5[%c1_26, %c0_27, %c0_28] : memref<2x16x16xf32, #tpu.memory_space<vmem>>, vector<1x16x16xf32>
    %29 = vector.shape_cast %28 : vector<1x16x16xf32> to vector<16x16xf32>
    %c0_29 = arith.constant 0 : index
    %c128_30 = arith.constant 128 : index
    %30 = vector.load %arg11[%c0_29, %c128_30] : memref<16x256xf32, #tpu.memory_space<vmem>>, vector<16x128xf32>
    %cst_31 = arith.constant dense<0.000000e+00> : vector<16x128xf32>
    %31 = tpu.matmul %29, %30, %cst_31 {dimension_numbers = #tpu.dot_dimension_numbers<[1], [0], [0], [1], [0, 0, 1, 1], [], []>, precision = #tpu.contract_precision<fp32>} : vector<16x16xf32>, vector<16x128xf32>, vector<16x128xf32> -> vector<16x128xf32>
    %32 = arith.addf %27, %31 : vector<16x128xf32>
    %c0_32 = arith.constant 0 : index
    %c0_33 = arith.constant 0 : index
    %33 = vector.load %arg6[%c0_32, %c0_33] : memref<16x1xf32, #tpu.memory_space<vmem>>, vector<16x1xf32>
    %34 = vector.broadcast %33 : vector<16x1xf32> to vector<16x128xf32>
    %35 = arith.addf %32, %34 : vector<16x128xf32>
    %cst_34 = arith.constant 0.000000e+00 : f32
    %36 = vector.broadcast %cst_34 : f32 to vector<16x128xf32>
    %37 = arith.maximumf %35, %36 : vector<16x128xf32>
    %c0_35 = arith.constant 0 : index
    %c0_36 = arith.constant 0 : index
    %38 = vector.load %arg7[%c0_35, %c0_36] : memref<16x8xf32, #tpu.memory_space<vmem>>, vector<16x8xf32>
    %cst_37 = arith.constant dense<0.000000e+00> : vector<16x128xf32>
    %39 = tpu.matmul %38, %7, %cst_37 {dimension_numbers = #tpu.dot_dimension_numbers<[1], [0], [0], [1], [0, 0, 1, 1], [], []>, precision = #tpu.contract_precision<fp32>} : vector<16x8xf32>, vector<8x128xf32>, vector<16x128xf32> -> vector<16x128xf32>
    %c0_38 = arith.constant 0 : index
    %c0_39 = arith.constant 0 : index
    %40 = vector.load %arg8[%c0_38, %c0_39] : memref<16x1xf32, #tpu.memory_space<vmem>>, vector<16x1xf32>
    %41 = vector.broadcast %40 : vector<16x1xf32> to vector<16x128xf32>
    %42 = arith.addf %39, %41 : vector<16x128xf32>
    %43 = arith.addf %37, %42 : vector<16x128xf32>
    %cst_40 = arith.constant 0.000000e+00 : f32
    %44 = vector.broadcast %cst_40 : f32 to vector<16x128xf32>
    %45 = arith.maximumf %43, %44 : vector<16x128xf32>
    %c0_41 = arith.constant 0 : index
    %c0_42 = arith.constant 0 : index
    %c0_43 = arith.constant 0 : index
    %46 = vector.load %arg9[%c0_41, %c0_42, %c0_43] : memref<1x16x128xf32, #tpu.memory_space<vmem>>, vector<1x16x128xf32>
    %47 = vector.shape_cast %46 : vector<1x16x128xf32> to vector<16x128xf32>
    %48 = vector.shape_cast %45 : vector<16x128xf32> to vector<1x16x128xf32>
    tpu.vector_store %arg9[%c0_41, %c0_42, %c0_43], %48 {strides = array<i32>} : memref<1x16x128xf32, #tpu.memory_space<vmem>>, vector<1x16x128xf32>,
    return
  }
  func.func @transform_0(%arg0: i32, %arg1: i32) -> (i32, i32, i32) {
    %c0_i32 = arith.constant 0 : i32
    %c0_i32_0 = arith.constant 0 : i32
    return %arg0, %c0_i32, %arg1 : i32, i32, i32
  }
  func.func @transform_1(%arg0: i32, %arg1: i32) -> (i32, i32, i32) {
    %c0_i32 = arith.constant 0 : i32
    %c0_i32_0 = arith.constant 0 : i32
    %c0_i32_1 = arith.constant 0 : i32
    %c0_i32_2 = arith.constant 0 : i32
    return %c0_i32, %c0_i32_0, %c0_i32_1 : i32, i32, i32
  }
  func.func @transform_2(%arg0: i32, %arg1: i32) -> (i32, i32) {
    %c0_i32 = arith.constant 0 : i32
    %c0_i32_0 = arith.constant 0 : i32
    %c0_i32_1 = arith.constant 0 : i32
    return %c0_i32, %c0_i32_0 : i32, i32
  }
  func.func @transform_3(%arg0: i32, %arg1: i32) -> (i32, i32, i32) {
    %c0_i32 = arith.constant 0 : i32
    %c0_i32_0 = arith.constant 0 : i32
    %c0_i32_1 = arith.constant 0 : i32
    %c0_i32_2 = arith.constant 0 : i32
    return %c0_i32, %c0_i32_0, %c0_i32_1 : i32, i32, i32
  }
  func.func @transform_4(%arg0: i32, %arg1: i32) -> (i32, i32) {
    %c0_i32 = arith.constant 0 : i32
    %c0_i32_0 = arith.constant 0 : i32
    %c0_i32_1 = arith.constant 0 : i32
    return %c0_i32, %c0_i32_0 : i32, i32
  }
  func.func @transform_5(%arg0: i32, %arg1: i32) -> (i32, i32) {
    %c0_i32 = arith.constant 0 : i32
    %c0_i32_0 = arith.constant 0 : i32
    %c0_i32_1 = arith.constant 0 : i32
    return %c0_i32, %c0_i32_0 : i32, i32
  }
  func.func @transform_6(%arg0: i32, %arg1: i32) -> (i32, i32) {
    %c0_i32 = arith.constant 0 : i32
    %c0_i32_0 = arith.constant 0 : i32
    %c0_i32_1 = arith.constant 0 : i32
    return %c0_i32, %c0_i32_0 : i32, i32
  }
  func.func @transform_7(%arg0: i32, %arg1: i32) -> (i32, i32, i32) {
    %c0_i32 = arith.constant 0 : i32
    %c0_i32_0 = arith.constant 0 : i32
    return %arg0, %c0_i32, %arg1 : i32, i32, i32
  }
}

</mosaic_0001>

<bundles_post_ra>
// kernel: _lambda_.3
= control target key start
LH: loop header
LB: loop body
LE: loop exit
PB: predicated region body
PF: predicated region fallthrough
CT: control target
= control target key end

     0   :  { %12 = vsyncpa [#allocation5], 0  ;;  %s3451_s0 = inlined_call_operand.vmem [shape: f32[2,3,128], index: 0, kind: input, shape index: {}]   ;;  %s3452_s1 = inlined_call_operand.vmem [shape: f32[2,8,3], index: 1, kind: input, shape index: {}]   ;;  %s3453_s2 = inlined_call_operand.hbm [shape: f32[8,1], index: 2, kind: input, shape index: {}]   ;;  %s3454_s3 = inlined_call_operand.vmem [shape: f32[2,8,8], index: 3, kind: input, shape index: {}]   ;;  %s3455_s4 = inlined_call_operand.hbm [shape: f32[8,1], index: 4, kind: input, shape index: {}]   ;;  %s3456_s5 = inlined_call_operand.vmem [shape: f32[8,3], index: 5, kind: input, shape index: {}]   ;;  %s3457_s6 = inlined_call_operand.hbm [shape: f32[8,1], index: 6, kind: input, shape index: {}]   ;;  %s3458_s7 = inlined_call_operand.vmem [shape: f32[2,8,128], index: 7, kind: output, shape index: {}]  }
   0x1   :  { %13 = vsyncpa [#allocation7], 0  ;;  %s3220_s24 = smov 0   ;;  %s3222_s25 = smov 0  }
   0x2   :  { %s3224_s26 = smov 0  }
   0x3 LB: > { %s3173_s27 = smov [#allocation6]   ;;  %s2774_s29 = sadd.s32 4294967295, %s3171_s26   ;;  %s3171_s26 = sphi %s3224_s26, %s19_s26   ;;  %s3167_s25 = sphi %s3222_s25, %s3464_s25   ;;  %s3163_s24 = sphi %s3220_s24, %s3463_s24  }
   0x4   : > { %s248_s28 = sshll.u32 %s3173_s27, 4  ;;  %p2776_p0 = scmp.ge.s32.totalorder %s3171_s26, 1  ;;  %s249_s28 = int_to_ptr.vmem [resolvable:$true] %s248_s28 }
   0x5   : > { %p218_p1 = scmp.lt.s32.totalorder %s3171_s26, 3  ;;  %p3238_p2 = scmp.eq.s32.totalorder %s2774_s29, 0 }
   0x6   : > { %s31_s9 = sadd.s32 1, %s3167_s25  ;;  %s3174_s12 = smov [#allocation4]  }
   0x7   : > { %p3242_p3 = pnand %p2776_p0, %p218_p1  ;;  %p3255_p6 = scmp.ge.s32.totalorder %s31_s9, 2 }
   0x8   : > { %s234_s13 = sshll.u32 %s3174_s12, 4  ;;  %s3074_s14 = scalar_lea.vmem %s249_s28, 128  ;;  %s235_s13 = int_to_ptr.vmem [resolvable:$true] %s234_s13 }
   0x9   : > { %p3013_p4 = pneg %p3242_p3  ;;  %p3075_p8 = scmp.ne.s32.totalorder %s249_s28, %s3074_s14 }
   0xa   : > { %p3082_p11 = scmp.lt.s32.totalorder %s249_s28, %s249_s28  ;;  %p3083_p12 = scmp.lt.s32.totalorder %s3074_s14, %s3074_s14 }
   0xb   : > { %p3251_p5 = pnand %p3238_p2, %p3013_p4 }
   0xc   : > { %p3084_p13 = por %p3083_p12, %p3082_p11 }
   0xd   : > { %p3065_p7 = pneg %p3251_p5 }
   0xf   : > { %p3077_p9 = pnand %p3075_p8, %p3065_p7 }
  0x11   : > { %p3078_p10 = pneg %p3077_p9 }
  0x13   : > { %p3085_p0 = pnand %p3084_p13, %p3078_p10 }
  0x15   : > { %3088 = shalt.err (!%p3085_p0)
}
  0x16   : > { %3019 = dma.hbm_to_vmem [thread:$0]  (!%p3251_p5), %s3455_s4, 128, %s249_s28, [#allocation7]  }
  0x17   : > { %s3466_s9 = smov (%p3255_p6, %s31_s9), 0  ;;  %s3100_s17 = scalar_lea.vmem %s235_s13, 128 }
  0x18   : > { %p3101_p1 = scmp.ne.s32.totalorder %s235_s13, %s3100_s17  ;;  %p3108_p9 = scmp.lt.s32.totalorder %s235_s13, %s235_s13 }
  0x19   : > { %p3109_p10 = scmp.lt.s32.totalorder %s3100_s17, %s3100_s17 }
  0x1a   : > { %p3103_p4 = pnand %p3101_p1, %p3065_p7 }
  0x1b   : > { %p3110_p11 = por %p3109_p10, %p3108_p9 }
  0x1c   : > { %p3104_p8 = pneg %p3103_p4 }
  0x1e   : > { %p3111_p12 = pnand %p3110_p11, %p3104_p8 }
  0x20   : > { %3114 = shalt.err (!%p3111_p12)
}
  0x21   : > { %3016 = dma.hbm_to_vmem [thread:$0]  (!%p3251_p5), %s3453_s2, 128, %s235_s13, [#allocation5]  }
  0x22   : > { %s3175_s20 = smov [#allocation8]  }
  0x23   : > { %s262_s21 = sshll.u32 %s3175_s20, 4  ;;  %s263_s21 = int_to_ptr.vmem [resolvable:$true] %s262_s21 }
  0x24   : > { %s3126_s22 = scalar_lea.vmem %s263_s21, 128  ;;  %p3134_p1 = scmp.lt.s32.totalorder %s263_s21, %s263_s21 }
  0x25   : > { %p3127_p6 = scmp.ne.s32.totalorder %s263_s21, %s3126_s22  ;;  %p3135_p4 = scmp.lt.s32.totalorder %s3126_s22, %s3126_s22 }
  0x27   : > { %p3129_p13 = pnand %p3127_p6, %p3065_p7  ;;  %p3136_p8 = por %p3135_p4, %p3134_p1 }
  0x29   : > { %p3130_p0 = pneg %p3129_p13 }
  0x2b   : > { %p3137_p9 = pnand %p3136_p8, %p3130_p0 }
  0x2d   : > { %3140 = shalt.err (!%p3137_p9)
}
  0x2e   : > { %3022 = dma.hbm_to_vmem [thread:$0]  (!%p3251_p5), %s3457_s6, 128, %s263_s21, [#allocation7]  }
  0x2f   : > { %285 = sbr.rel (%p3242_p3) target bundleno = 755 (0x2f3), region = 48 }
  0x34   : > { %3154 = dma.done.wait (%p3238_p2), [#allocation5], 128  }
  0x35   : > { %3156 = vsyncadd (%p3238_p2), [#allocation5], 4294967168 }
  0x36   : > { %3158 = dma.done.wait (%p3238_p2), [#allocation7], 256  }
  0x37   : > { %3160 = vsyncadd (%p3238_p2), [#allocation7], 4294967040  ;;  %p329_p7 = scmp.lt.s32.totalorder %s3163_s24, 1  ;;  %v3176_v0 = vmov 0.0   ;;  %vm3177_vm0 = vmmov 0   ;;  %vm364_vm1 = vcmask 23552  }
  0x38   : > { %347 = vst [vmem:[#allocation2] sm:$0x7] %v3176_v0  ;;  %2851 = vmatprep.subr.mxu0 %v3176_v0  ;;  %2856 = vmatprep.subr.mxu1 %v3176_v0  ;;  %v2787_v2 = vld [vmem:[%s3452_s1 + $0x8] sm:$0xff]  ;;  %vm368_vm2 = vcmask 1042432   ;;  %s3178_s12 = smov 1   ;;  %v1277_v18 = vld [vmem:[#allocation4] sm:$0xff] }
  0x39   : > { %s3468_s24 = smov (!%p329_p7, %s3163_s24), 1  ;;  %2853 = vmatprep.mubr.msk.f32.mxu0 %vm3177_vm0, %v3176_v0  ;;  %2858 = vmatprep.mubr.msk.f32.mxu1 %vm3177_vm0, %v3176_v0  ;;  %v366_v3 = vsel %vm364_vm1, %v2787_v2, 0  ;;  %v3179_v19 = vmov 0   ;;  %v2207_v20 = vld [vmem:[#allocation8] sm:$0xff]  ;;  %vm824_vm3 = vcmask 7168   ;;  %v2788_v55 = vld [vmem:[%s3454_s3 + $0x8] sm:$0xff] }
  0x3a   : > { %s2785_s28 = sshll.u32 %s3468_s24, 2  ;;  %v438_v4 = vand.u32 4294901760, %v366_v3  ;;  %3060 = vset.pattern.permute.xlu1 %v3179_v19  ;;  %3061 = vset.pattern.permute.xlu0 %v3179_v19  ;;  %v359_v21 = vld [vmem:[%s3452_s1] sm:$0xff]  ;;  %vm1291_vm4 = vcmask 64512   ;;  %s2786_s21 = sshll.u32 %s3468_s24, 3 }
  0x3b   : > { %s335_s8 = scalar_lea.vmem %s3451_s0, %s2785_s28  ;;  %1280 = vperm.xlu1 %3060, %v1277_v18   ;;  %v827_v22 = vsel %vm364_vm1, %v359_v21, 0  ;;  %v1293_v57 = vsel %vm1291_vm4, %v2788_v55, 0  ;;  %s342_s27 = scalar_lea.vmem %s3458_s7, %s2786_s21 }
  0x3c   : > { %v3314_v1 = vld [vmem:[%s335_s8] sm:$0x7]  ;;  %v439_v5 = vsub.f32 %v366_v3, %v438_v4  ;;  %v897_v23 = vand.u32 4294901760, %v827_v22  ;;  %v1361_v60 = vand.u32 4294901760, %v1293_v57 }
  0x3d   : > { %358 = vst [vmem:[#allocation2 + $0x4] sm:$0x7] %v3314_v1 }
  0x3e   : > { %v440_v6 = vand.u32 4294901760, %v439_v5  ;;  %v898_v24 = vsub.f32 %v827_v22, %v897_v23 }
  0x3f   : > { %1743 = vrot.lane.b32.xlu1 %v3176_v0, %s3178_s12 }
  0x40   : > { %v441_v9 = vsub.f32 %v439_v5, %v440_v6  ;;  %v899_v25 = vand.u32 4294901760, %v898_v24 }
  0x42   : > { %v442_v13 = vand.u32 4294901760, %v441_v9  ;;  %v900_v27 = vsub.f32 %v898_v24, %v899_v25 }
  0x43   : > { %2210 = vperm.xlu1 %3060, %v2207_v20  }
  0x44   : > { %v360_v7 = vld [vmem:[#allocation2] sm:$0x77]  ;;  %v901_v31 = vand.u32 4294901760, %v900_v27 }
  0x45   : > { %v363_v8 = vld [vmem:[#allocation2 + $0x4] sm:$0x7]  ;;  %820 = vrot.lane.b32.xlu0 %v360_v7, %s3178_s12  ;;  %v819_v10 = vcombine.high %v360_v7, %v360_v7 }
  0x46   : > { %v370_v11 = vsel %vm368_vm2, %v363_v8, 0 }
  0x47   : > { %v403_v12 = vand.u32 4294901760, %v370_v11 }
  0x49   : > { %2852 = vmatpush3.msra.mxu0 %v403_v12  ;;  %v480_v14 = vsub.f32 %v370_v11, %v403_v12  ;;  %822 = vrot.lane.b32.xlu0 %v819_v10, %s3178_s12 }
  0x4a   : > { %2854 = vmatmul.mubr.f32.vlgmr.msra.gmra.mxu0 %v442_v13  ;;  %2861 = vmatprep.subr.mxu0 %v3176_v0 }
  0x4b   : > { %2863 = vmatprep.mubr.msk.f32.mxu0 %vm3177_vm0, %v3176_v0  ;;  %v481_v15 = vand.u32 4294901760, %v480_v14  ;;  %2862 = vmatpush3.msra.mxu0 %v480_v14 }
  0x4c   : > { %2871 = vmatprep.subr.mxu0 %v3176_v0 }
  0x4d   : > { %v482_v16 = vsub.f32 %v480_v14, %v481_v15 }
  0x4e   : > { %2864 = vmatmul.mubr.f32.vlgmr.msra.gmra.mxu0 %v439_v5 }
  0x4f   : > { %v483_v17 = vand.u32 4294901760, %v482_v16  ;;  %2872 = vmatpush3.msra.mxu0 %v481_v15  ;;  %2873 = vmatprep.mubr.msk.f32.mxu0 %vm3177_vm0, %v3176_v0 }
  0x50   : > { %2881 = vmatprep.subr.mxu0 %v3176_v0 }
  0x51   : > { %2857 = vmatpush3.msra.mxu1 %v483_v17 }
  0x52   : > { %2859 = vmatmul.mubr.f32.vlgmr.msra.gmra.mxu1 %v438_v4  ;;  %2866 = vmatprep.subr.mxu1 %v3176_v0 }
  0x53   : > { %2874 = vmatmul.mubr.f32.vlgmr.msra.gmra.mxu0 %v438_v4  ;;  %2867 = vmatpush3.msra.mxu1 %v403_v12 }
  0x54   : > { %2868 = vmatprep.mubr.msk.f32.mxu1 %vm3177_vm0, %v3176_v0  ;;  %2883 = vmatprep.mubr.msk.f32.mxu0 %vm3177_vm0, %v3176_v0 }
  0x55   : > { %2876 = vmatprep.subr.mxu1 %v3176_v0 }
  0x56   : > { %2869 = vmatmul.mubr.f32.vlgmr.msra.gmra.mxu1 %v440_v6 }
  0x57   : > { %2877 = vmatpush3.msra.mxu1 %v403_v12  ;;  %2878 = vmatprep.mubr.msk.f32.mxu1 %vm3177_vm0, %v3176_v0 }
  0x58   : > { %2886 = vmatprep.subr.mxu1 %v3176_v0 }
  0x5a   : > { %2879 = vmatmul.mubr.f32.vlgmr.msra.gmra.mxu1 %v438_v4  ;;  %v1362_v4 = vsub.f32 %v1293_v57, %v1361_v60 }
  0x5b   : > { %2888 = vmatprep.mubr.msk.f32.mxu1 %vm3177_vm0, %v3176_v0 }
  0x5c   : > { %v1363_v10 = vand.u32 4294901760, %v1362_v4 }
  0x5e   : > { %v1364_v16 = vsub.f32 %v1362_v4, %v1363_v10 }
  0x60   : > { %v1365_v19 = vand.u32 4294901760, %v1364_v16 }
  0xb6   : > { %v1281_v14 = vpop.permute.xlu1 %1280 }
  0xb7   : > { %v821_v26 = vpop.permute.xlu0 %820 }
  0xbb   : > { %v823_v28 = vpop.permute.xlu0 %822 }
  0xbc   : > { %v825_v29 = vsel %vm824_vm3, %v821_v26, %v823_v28  ;;  %v1286_v26 = vld [vmem:[%s3454_s3] sm:$0xff] }
  0xbd   : > { %v829_v30 = vsel %vm368_vm2, %v825_v29, 0  ;;  %v1750_v27 = vsel %vm1291_vm4, %v1286_v26, 0 }
  0xbe   : > { %v862_v32 = vand.u32 4294901760, %v829_v30  ;;  %v1818_v28 = vand.u32 4294901760, %v1750_v27 }
  0xc0   : > { %v939_v33 = vsub.f32 %v829_v30, %v862_v32  ;;  %2882 = vmatpush3.msra.mxu0 %v862_v32  ;;  %v1819_v29 = vsub.f32 %v1750_v27, %v1818_v28  ;;  %v2206_v30 = vld [vmem:[%s3456_s5] sm:$0xff] }
  0xc1   : > { %2884 = vmatmul.mubr.f32.vlgmr.msra.gmra.mxu0 %v901_v31  ;;  %2891 = vmatprep.subr.mxu0 %v3176_v0 }
  0xc2   : > { %2892 = vmatpush3.msra.mxu0 %v939_v33  ;;  %2893 = vmatprep.mubr.msk.f32.mxu0 %vm3177_vm0, %v3176_v0  ;;  %v940_v34 = vand.u32 4294901760, %v939_v33  ;;  %v1820_v31 = vand.u32 4294901760, %v1819_v29 }
  0xc3   : > { %2901 = vmatprep.subr.mxu0 %v3176_v0 }
  0xc4   : > { %v941_v35 = vsub.f32 %v939_v33, %v940_v34  ;;  %v1821_v33 = vsub.f32 %v1819_v29, %v1820_v31 }
  0xc5   : > { %2894 = vmatmul.mubr.f32.vlgmr.msra.gmra.mxu0 %v898_v24 }
  0xc6   : > { %2902 = vmatpush3.msra.mxu0 %v940_v34  ;;  %v942_v36 = vand.u32 4294901760, %v941_v35  ;;  %2903 = vmatprep.mubr.msk.f32.mxu0 %vm3177_vm0, %v3176_v0  ;;  %v2217_v35 = vsel %vm368_vm2, %v3314_v1, 0 }
  0xc7   : > { %2911 = vmatprep.subr.mxu0 %v3176_v0 }
  0xc8   : > { %2887 = vmatpush3.msra.mxu1 %v942_v36  ;;  %v1744_v36 = vpop.permute.xlu1 %1743 }
  0xc9   : > { %2889 = vmatmul.mubr.f32.vlgmr.msra.gmra.mxu1 %v897_v23  ;;  %2896 = vmatprep.subr.mxu1 %v3176_v0 }
  0xca   : > { %2897 = vmatpush3.msra.mxu1 %v862_v32  ;;  %2898 = vmatprep.mubr.msk.f32.mxu1 %vm3177_vm0, %v3176_v0 }
  0xcb   : > { %2906 = vmatprep.subr.mxu1 %v3176_v0  ;;  %2904 = vmatmul.mubr.f32.vlgmr.msra.gmra.mxu0 %v897_v23 }
  0xcc   : > { %2913 = vmatprep.mubr.msk.f32.mxu0 %vm3177_vm0, %v3176_v0 }
  0xcd   : > { %2899 = vmatmul.mubr.f32.vlgmr.msra.gmra.mxu1 %v899_v25  ;;  %v2198_v25 = vld [vmem:[#allocation6] sm:$0xff] }
  0xce   : > { %2907 = vmatpush3.msra.mxu1 %v862_v32  ;;  %2908 = vmatprep.mubr.msk.f32.mxu1 %vm3177_vm0, %v3176_v0  ;;  %v2214_v32 = vsel %vm364_vm1, %v2206_v30, 0 }
  0xcf   : > { %2916 = vmatprep.subr.mxu1 %v3176_v0  ;;  %v3399_v34 = vand.u32 4294901760, %v2214_v32 }
  0xd1   : > { %2909 = vmatmul.mubr.f32.vlgmr.msra.gmra.mxu1 %v897_v23 }
  0xd2   : > { %2918 = vmatprep.mubr.msk.f32.mxu1 %vm3177_vm0, %v3176_v0 }
 0x10a   : > { %v444_v37 = vpop.f32.mrf.mxu0 }
 0x10c   : > { %v2855_v38 = vpop.f32.mrf.mxu0 }
 0x10e   : > { %v594_v39 = vpop.f32.mrf.mxu0 }
 0x110   : > { %v2865_v40 = vpop.f32.mrf.mxu0 }
 0x112   : > { %v520_v41 = vpop.f32.mrf.mxu1 }
 0x113   : > { %v521_v42 = vadd.f32 %v520_v41, %v444_v37  ;;  %v742_v43 = vpop.f32.mrf.mxu0  ;;  %v2250_v41 = vand.u32 4294901760, %v2217_v35 }
 0x114   : > { %v2860_v44 = vpop.f32.mrf.mxu1 }
 0x115   : > { %v595_v45 = vadd.f32 %v594_v39, %v521_v42  ;;  %v2875_v46 = vpop.f32.mrf.mxu0  ;;  %v1822_v39 = vand.u32 4294901760, %v1821_v33  ;;  %v2286_v42 = vsub.f32 %v2214_v32, %v3399_v34  ;;  %v2327_v1 = vsub.f32 %v2217_v35, %v2250_v41 }
 0x116   : > { %v668_v47 = vpop.f32.mrf.mxu1 }
 0x117   : > { %v669_v48 = vadd.f32 %v668_v47, %v595_v45  ;;  %v2287_v45 = vand.u32 4294901760, %v2286_v42 }
 0x118   : > { %v2870_v49 = vpop.f32.mrf.mxu1 }
 0x119   : > { %v743_v50 = vadd.f32 %v742_v43, %v669_v48  ;;  %v2288_v48 = vsub.f32 %v2286_v42, %v2287_v45  ;;  %v2328_v49 = vand.u32 4294901760, %v2327_v1 }
 0x11a   : > { %v814_v51 = vpop.f32.mrf.mxu1 }
 0x11b   : > { %v815_v52 = vadd.f32 %v814_v51, %v743_v50  ;;  %v2289_v50 = vand.u32 4294901760, %v2288_v48  ;;  %v2329_v51 = vsub.f32 %v2327_v1, %v2328_v49 }
 0x11c   : > { %v2880_v53 = vpop.f32.mrf.mxu1 }
 0x181   : > { %v903_v54 = vpop.f32.mrf.mxu0 }
 0x182   : > { %v904_v61 = vadd.f32 %v903_v54, %v815_v52  ;;  %v2330_v52 = vand.u32 4294901760, %v2329_v51 }
 0x183   : > { %v2885_v56 = vpop.f32.mrf.mxu0 }
 0x185   : > { %v1053_v58 = vpop.f32.mrf.mxu0 }
 0x187   : > { %v2895_v59 = vpop.f32.mrf.mxu0 }
 0x189   : > { %v979_v62 = vpop.f32.mrf.mxu1 }
 0x18a   : > { %v980_v63 = vadd.f32 %v979_v62, %v904_v61 }
 0x18b   : > { %v2890_v2 = vpop.f32.mrf.mxu1  ;;  %v1201_v3 = vpop.f32.mrf.mxu0 }
 0x18c   : > { %v1054_v5 = vadd.f32 %v1053_v58, %v980_v63 }
 0x18d   : > { %v1127_v6 = vpop.f32.mrf.mxu1  ;;  %v2905_v7 = vpop.f32.mrf.mxu0 }
 0x18e   : > { %v1128_v8 = vadd.f32 %v1127_v6, %v1054_v5 }
 0x18f   : > { %v2900_v9 = vpop.f32.mrf.mxu1 }
 0x190   : > { %v1202_v11 = vadd.f32 %v1201_v3, %v1128_v8 }
 0x191   : > { %v1273_v12 = vpop.f32.mrf.mxu1 }
 0x192   : > { %v1274_v13 = vadd.f32 %v1273_v12, %v1202_v11 }
 0x193   : > { %v2910_v15 = vpop.f32.mrf.mxu1 }
 0x194   : > { %v1283_v17 = vadd.f32 %v1281_v14, %v1274_v13 }
 0x196   : > { %v1284_v18 = vmax.f32 %v1283_v17, 0.0 }
 0x198   : > { %1745 = vrot.lane.b32.xlu0 %v1284_v18, %s3178_s12  ;;  %v1326_v20 = vand.u32 4294901760, %v1284_v18 }
 0x19a   : > { %2912 = vmatpush3.msra.mxu0 %v1326_v20  ;;  %v1403_v21 = vsub.f32 %v1284_v18, %v1326_v20 }
 0x19b   : > { %2914 = vmatmul.mubr.f32.vlgmr.msra.gmra.mxu0 %v1365_v19  ;;  %2921 = vmatprep.subr.mxu0 %v3176_v0 }
 0x19c   : > { %2922 = vmatpush3.msra.mxu0 %v1403_v21  ;;  %2923 = vmatprep.mubr.msk.f32.mxu0 %vm3177_vm0, %v3176_v0  ;;  %v1404_v22 = vand.u32 4294901760, %v1403_v21 }
 0x19d   : > { %2931 = vmatprep.subr.mxu0 %v3176_v0  ;;  %2201 = vperm.xlu0 %3061, %v2198_v25  }
 0x19e   : > { %v1405_v23 = vsub.f32 %v1403_v21, %v1404_v22 }
 0x19f   : > { %2924 = vmatmul.mubr.f32.vlgmr.msra.gmra.mxu0 %v1362_v4 }
 0x1a0   : > { %2932 = vmatpush3.msra.mxu0 %v1404_v22  ;;  %v1406_v24 = vand.u32 4294901760, %v1405_v23  ;;  %2933 = vmatprep.mubr.msk.f32.mxu0 %vm3177_vm0, %v3176_v0 }
 0x1a1   : > { %2941 = vmatprep.subr.mxu0 %v3176_v0 }
 0x1a2   : > { %2917 = vmatpush3.msra.mxu1 %v1406_v24  ;;  %v2211_v24 = vpop.permute.xlu1 %2210 }
 0x1a3   : > { %2919 = vmatmul.mubr.f32.vlgmr.msra.gmra.mxu1 %v1361_v60  ;;  %2926 = vmatprep.subr.mxu1 %v3176_v0 }
 0x1a4   : > { %2927 = vmatpush3.msra.mxu1 %v1326_v20  ;;  %2928 = vmatprep.mubr.msk.f32.mxu1 %vm3177_vm0, %v3176_v0 }
 0x1a5   : > { %2936 = vmatprep.subr.mxu1 %v3176_v0  ;;  %2934 = vmatmul.mubr.f32.vlgmr.msra.gmra.mxu0 %v1361_v60 }
 0x1a6   : > { %2943 = vmatprep.mubr.msk.f32.mxu0 %vm3177_vm0, %v3176_v0 }
 0x1a7   : > { %2929 = vmatmul.mubr.f32.vlgmr.msra.gmra.mxu1 %v1363_v10 }
 0x1a8   : > { %2937 = vmatpush3.msra.mxu1 %v1326_v20  ;;  %2938 = vmatprep.mubr.msk.f32.mxu1 %vm3177_vm0, %v3176_v0 }
 0x1a9   : > { %2946 = vmatprep.subr.mxu1 %v3176_v0 }
 0x1ab   : > { %2939 = vmatmul.mubr.f32.vlgmr.msra.gmra.mxu1 %v1361_v60 }
 0x1ac   : > { %2948 = vmatprep.mubr.msk.f32.mxu1 %vm3177_vm0, %v3176_v0 }
 0x20a   : > { %v1746_v37 = vpop.permute.xlu0 %1745 }
 0x20b   : > { %v1747_v38 = vsel %vm824_vm3, %v1744_v36, %v1746_v37 }
 0x20c   : > { %v1783_v40 = vand.u32 4294901760, %v1747_v38 }
 0x20e   : > { %v1860_v43 = vsub.f32 %v1747_v38, %v1783_v40  ;;  %2942 = vmatpush3.msra.mxu0 %v1783_v40 }
 0x20f   : > { %2944 = vmatmul.mubr.f32.vlgmr.msra.gmra.mxu0 %v1822_v39  ;;  %2951 = vmatprep.subr.mxu0 %v3176_v0 }
 0x210   : > { %v1861_v44 = vand.u32 4294901760, %v1860_v43  ;;  %2952 = vmatpush3.msra.mxu0 %v1860_v43  ;;  %2953 = vmatprep.mubr.msk.f32.mxu0 %vm3177_vm0, %v3176_v0 }
 0x211   : > { %2961 = vmatprep.subr.mxu0 %v3176_v0 }
 0x212   : > { %v1862_v46 = vsub.f32 %v1860_v43, %v1861_v44 }
 0x213   : > { %2954 = vmatmul.mubr.f32.vlgmr.msra.gmra.mxu0 %v1819_v29 }
 0x214   : > { %2962 = vmatpush3.msra.mxu0 %v1861_v44  ;;  %v1863_v47 = vand.u32 4294901760, %v1862_v46  ;;  %2963 = vmatprep.mubr.msk.f32.mxu0 %vm3177_vm0, %v3176_v0 }
 0x215   : > { %2971 = vmatprep.subr.mxu0 %v3176_v0 }
 0x216   : > { %2947 = vmatpush3.msra.mxu1 %v1863_v47 }
 0x217   : > { %2949 = vmatmul.mubr.f32.vlgmr.msra.gmra.mxu1 %v1818_v28  ;;  %2956 = vmatprep.subr.mxu1 %v3176_v0 }
 0x218   : > { %2964 = vmatmul.mubr.f32.vlgmr.msra.gmra.mxu0 %v1818_v28  ;;  %2957 = vmatpush3.msra.mxu1 %v1783_v40  ;;  %v2202_v32 = vpop.permute.xlu0 %2201 }
 0x219   : > { %2958 = vmatprep.mubr.msk.f32.mxu1 %vm3177_vm0, %v3176_v0  ;;  %2966 = vmatprep.subr.mxu1 %v3176_v0 }
 0x21a   : > { %2972 = vmatpush3.msra.mxu0 %v2250_v41  ;;  %2973 = vmatprep.mubr.msk.f32.mxu0 %vm3177_vm0, %v3176_v0 }
 0x21b   : > { %2959 = vmatmul.mubr.f32.vlgmr.msra.gmra.mxu1 %v1820_v31  ;;  %2981 = vmatprep.subr.mxu0 %v3176_v0 }
 0x21c   : > { %2967 = vmatpush3.msra.mxu1 %v1783_v40  ;;  %2974 = vmatmul.mubr.f32.vlgmr.msra.gmra.mxu0 %v2289_v50 }
 0x21d   : > { %2968 = vmatprep.mubr.msk.f32.mxu1 %vm3177_vm0, %v3176_v0  ;;  %2976 = vmatprep.subr.mxu1 %v3176_v0 }
 0x21e   : > { %2982 = vmatpush3.msra.mxu0 %v2327_v1  ;;  %2983 = vmatprep.mubr.msk.f32.mxu0 %vm3177_vm0, %v3176_v0 }
 0x21f   : > { %2969 = vmatmul.mubr.f32.vlgmr.msra.gmra.mxu1 %v1818_v28  ;;  %2991 = vmatprep.subr.mxu0 %v3176_v0 }
 0x220   : > { %2977 = vmatpush3.msra.mxu1 %v2330_v52  ;;  %2978 = vmatprep.mubr.msk.f32.mxu1 %vm3177_vm0, %v3176_v0 }
 0x221   : > { %2984 = vmatmul.mubr.f32.vlgmr.msra.gmra.mxu0 %v2286_v42  ;;  %2986 = vmatprep.subr.mxu1 %v3176_v0 }
 0x222   : > { %2992 = vmatpush3.msra.mxu0 %v2328_v49  ;;  %2993 = vmatprep.mubr.msk.f32.mxu0 %vm3177_vm0, %v3176_v0 }
 0x223   : > { %2979 = vmatmul.mubr.f32.vlgmr.msra.gmra.mxu1 %v3399_v34 }
 0x224   : > { %2987 = vmatpush3.msra.mxu1 %v2250_v41  ;;  %2988 = vmatprep.mubr.msk.f32.mxu1 %vm3177_vm0, %v3176_v0 }
 0x225   : > { %2994 = vmatmul.mubr.f32.vlgmr.msra.gmra.mxu0 %v3399_v34  ;;  %2996 = vmatprep.subr.mxu1 %v3176_v0 }
 0x227   : > { %2989 = vmatmul.mubr.f32.vlgmr.msra.gmra.mxu1 %v2287_v45 }
 0x228   : > { %2997 = vmatpush3.msra.mxu1 %v2250_v41  ;;  %2998 = vmatprep.mubr.msk.f32.mxu1 %vm3177_vm0, %v3176_v0 }
 0x22b   : > { %2999 = vmatmul.mubr.f32.vlgmr.msra.gmra.mxu1 %v3399_v34 }
 0x25b   : > { %v1367_v53 = vpop.f32.mrf.mxu0 }
 0x25d   : > { %v2915_v54 = vpop.f32.mrf.mxu0 }
 0x25f   : > { %v1517_v55 = vpop.f32.mrf.mxu0 }
 0x261   : > { %v2925_v56 = vpop.f32.mrf.mxu0 }
 0x263   : > { %v1443_v57 = vpop.f32.mrf.mxu1 }
 0x264   : > { %v1444_v58 = vadd.f32 %v1443_v57, %v1367_v53 }
 0x265   : > { %v1665_v59 = vpop.f32.mrf.mxu0  ;;  %v2920_v60 = vpop.f32.mrf.mxu1 }
 0x266   : > { %v1518_v61 = vadd.f32 %v1517_v55, %v1444_v58 }
 0x267   : > { %v2935_v62 = vpop.f32.mrf.mxu0  ;;  %v1591_v63 = vpop.f32.mrf.mxu1 }
 0x268   : > { %v1592_v2 = vadd.f32 %v1591_v63, %v1518_v61 }
 0x269   : > { %v2930_v3 = vpop.f32.mrf.mxu1 }
 0x26a   : > { %v1666_v4 = vadd.f32 %v1665_v59, %v1592_v2 }
 0x26b   : > { %v1737_v5 = vpop.f32.mrf.mxu1 }
 0x26c   : > { %v1738_v6 = vadd.f32 %v1737_v5, %v1666_v4 }
 0x26d   : > { %v2940_v7 = vpop.f32.mrf.mxu1 }
 0x2cf   : > { %v1824_v0 = vpop.f32.mrf.mxu0 }
 0x2d0   : > { %v1825_v11 = vadd.f32 %v1824_v0, %v1738_v6 }
 0x2d1   : > { %v2945_v8 = vpop.f32.mrf.mxu0 }
 0x2d3   : > { %v1974_v9 = vpop.f32.mrf.mxu0 }
 0x2d5   : > { %v2955_v10 = vpop.f32.mrf.mxu0 }
 0x2d7   : > { %v1900_v12 = vpop.f32.mrf.mxu1 }
 0x2d8   : > { %v1901_v13 = vadd.f32 %v1900_v12, %v1825_v11  ;;  %v2122_v14 = vpop.f32.mrf.mxu0 }
 0x2d9   : > { %v2950_v15 = vpop.f32.mrf.mxu1 }
 0x2da   : > { %v2965_v16 = vpop.f32.mrf.mxu0  ;;  %v1975_v17 = vadd.f32 %v1974_v9, %v1901_v13 }
 0x2db   : > { %v2048_v18 = vpop.f32.mrf.mxu1 }
 0x2dc   : > { %v2049_v19 = vadd.f32 %v2048_v18, %v1975_v17  ;;  %v2291_v20 = vpop.f32.mrf.mxu0 }
 0x2dd   : > { %v2960_v21 = vpop.f32.mrf.mxu1  ;;  %v2292_v28 = vadd.f32 %v2291_v20, %v2211_v24 }
 0x2de   : > { %v2975_v22 = vpop.f32.mrf.mxu0  ;;  %v2123_v25 = vadd.f32 %v2122_v14, %v2049_v19 }
 0x2df   : > { %v2194_v23 = vpop.f32.mrf.mxu1 }
 0x2e0   : > { %v2195_v31 = vadd.f32 %v2194_v23, %v2123_v25 }
 0x2e1   : > { %v2970_v26 = vpop.f32.mrf.mxu1  ;;  %v2441_v27 = vpop.f32.mrf.mxu0 }
 0x2e2   : > { %v2204_v39 = vadd.f32 %v2202_v32, %v2195_v31 }
 0x2e3   : > { %v2367_v29 = vpop.f32.mrf.mxu1  ;;  %v2985_v30 = vpop.f32.mrf.mxu0 }
 0x2e4   : > { %v2368_v33 = vadd.f32 %v2367_v29, %v2292_v28  ;;  %v2205_v44 = vmax.f32 %v2204_v39, 0.0 }
 0x2e5   : > { %v2980_v34 = vpop.f32.mrf.mxu1  ;;  %v2589_v35 = vpop.f32.mrf.mxu0 }
 0x2e6   : > { %v2442_v36 = vadd.f32 %v2441_v27, %v2368_v33 }
 0x2e7   : > { %v2515_v37 = vpop.f32.mrf.mxu1  ;;  %v2995_v38 = vpop.f32.mrf.mxu0 }
 0x2e8   : > { %v2516_v40 = vadd.f32 %v2515_v37, %v2442_v36 }
 0x2e9   : > { %v2990_v41 = vpop.f32.mrf.mxu1 }
 0x2ea   : > { %v2590_v42 = vadd.f32 %v2589_v35, %v2516_v40 }
 0x2eb   : > { %v2661_v43 = vpop.f32.mrf.mxu1 }
 0x2ec   : > { %v2662_v1 = vadd.f32 %v2661_v43, %v2590_v42 }
 0x2ed   : > { %v3000_v45 = vpop.f32.mrf.mxu1 }
 0x2ee   : > { %v2665_v46 = vadd.f32 %v2662_v1, %v2205_v44 }
 0x2f0   : > { %v2666_v47 = vmax.f32 %v2665_v46, 0.0 }
 0x2f2   : > { %2667 = vst [vmem:[%s342_s27] sm:$0xff] %v2666_v47 }
 0x2f3 PF: > { %s19_s26 = sadd.s32 1, %s3171_s26   ;;  %s3463_s24 = smov %s3167_s25 }
 0x2f4   : > { %p16_p2 = scmp.ge.s32.totalorder %s19_s26, 4   ;;  %s3464_s25 = smov %s3466_s9 }
 0x2f6   :  { %18 = sbr.rel (!%p16_p2) target bundleno = 3 (0x3), region = 101 }
 0x2fb   :  { %2693 = vsyncpa [#allocation5], 1 }
 0x2fc   :  { %2695 = vsyncpa [#allocation5 + $0x1], 1 }
 0x2fd   :  { %2696 = vsyncpa [#allocation7], 1 }

// kernel: _lambda_.4
= control target key start
LH: loop header
LB: loop body
LE: loop exit
PB: predicated region body
PF: predicated region fallthrough
CT: control target
= control target key end

     0   :  { %s2452_s18 = smov 0   ;;  %s2454_s19 = smov 0   ;;  %s2600_s0 = inlined_call_operand.vmem [shape: f32[2,8,128], index: 0, kind: input, shape index: {}]   ;;  %s2601_s1 = inlined_call_operand.vmem [shape: f32[2,8,8], index: 1, kind: input, shape index: {}]   ;;  %s2602_s2 = inlined_call_operand.vmem [shape: f32[8,1], index: 2, kind: input, shape index: {}]   ;;  %s2603_s3 = inlined_call_operand.vmem [shape: f32[2,8,8], index: 3, kind: input, shape index: {}]   ;;  %s2604_s4 = inlined_call_operand.vmem [shape: f32[8,1], index: 4, kind: input, shape index: {}]   ;;  %s2605_s5 = inlined_call_operand.vmem [shape: f32[2,8,128], index: 5, kind: output, shape index: {}]  }
   0x1   :  { %s2456_s20 = smov 0  }
   0x2 LB: > { %s27_s21 = sadd.s32 1, %s2412_s19  ;;  %p2189_p0 = scmp.ge.s32.totalorder %s2416_s20, 1  ;;  %s2416_s20 = sphi %s2456_s20, %s15_s20   ;;  %s2412_s19 = sphi %s2454_s19, %s2607_s19   ;;  %s2408_s18 = sphi %s2452_s18, %s2606_s18  }
   0x3   : > { %p29_p1 = scmp.ge.s32.totalorder %s27_s21, 2  ;;  %p205_p2 = scmp.lt.s32.totalorder %s2416_s20, 3 }
   0x5   : > { %s2609_s21 = smov (%p29_p1, %s27_s21), 0  ;;  %p206_p3 = pnand %p2189_p0, %p205_p2 }
   0x6   : > { %p237_p4 = scmp.lt.s32.totalorder (!%p206_p3), %s2408_s18, 1  ;;  %s2419_s24 = smov (!%p206_p3), 2  }
   0x7   : > { %209 = sbr.rel (%p206_p3) target bundleno = 690 (0x2b2), region = 40 }
   0xc   : > { %v2192_v0 = vld [vmem:[%s2601_s1 + $0x8] sm:$0xff]  ;;  %vm272_vm0 = vcmask 64512   ;;  %v2418_v1 = vmov 0.0   ;;  %s2611_s18 = smov (!%p237_p4, %s2408_s18), 1  ;;  %vm2420_vm1 = vmmov 0   ;;  %v1180_v13 = vld [vmem:[%s2602_s2] sm:$0xff] }
   0xd   : > { %724 = vrot.lane.b32.xlu0 %v2418_v1, %s2419_s24  ;;  %2244 = vmatprep.subr.mxu0 %v2418_v1  ;;  %v274_v2 = vsel %vm272_vm0, %v2192_v0, 0  ;;  %s2190_s25 = sshll.u32 %s2611_s18, 3  ;;  %v2421_v15 = vmov 0   ;;  %v2100_v16 = vld [vmem:[%s2604_s4] sm:$0xff]  ;;  %vm728_vm2 = vcmask 15360   ;;  %v2193_v50 = vld [vmem:[%s2603_s3 + $0x8] sm:$0xff] }
   0xe   : > { %2246 = vmatprep.mubr.msk.f32.mxu0 %vm2420_vm1, %v2418_v1  ;;  %v342_v3 = vand.u32 4294901760, %v274_v2  ;;  %2249 = vmatprep.subr.mxu1 %v2418_v1  ;;  %s243_s28 = scalar_lea.vmem %s2600_s0, %s2190_s25  ;;  %v267_v17 = vld [vmem:[%s2601_s1] sm:$0xff]  ;;  %v1195_v52 = vsel %vm272_vm0, %v2193_v50, 0  ;;  %s250_s16 = scalar_lea.vmem %s2605_s5, %s2190_s25 }
   0xf   : > { %2251 = vmatprep.mubr.msk.f32.mxu1 %vm2420_vm1, %v2418_v1  ;;  %v2490_v5 = vld [vmem:[%s243_s28] sm:$0xff]  ;;  %2392 = vset.pattern.permute.xlu1 %v2421_v15  ;;  %v732_v18 = vsel %vm272_vm0, %v267_v17, 0  ;;  %v1263_v55 = vand.u32 4294901760, %v1195_v52 }
  0x10   : > { %v343_v4 = vsub.f32 %v274_v2, %v342_v3  ;;  %v307_v7 = vand.u32 4294901760, %v2490_v5  ;;  %2393 = vset.pattern.permute.xlu0 %v2421_v15  ;;  %1183 = vperm.xlu1 %2392, %v1180_v13   ;;  %v800_v19 = vand.u32 4294901760, %v732_v18 }
  0x11   : > { %726 = vrot.lane.b32.xlu0 %v2490_v5, %s2419_s24  ;;  %v1264_v61 = vsub.f32 %v1195_v52, %v1263_v55 }
  0x12   : > { %v344_v6 = vand.u32 4294901760, %v343_v4  ;;  %2245 = vmatpush3.msra.mxu0 %v307_v7  ;;  %v384_v9 = vsub.f32 %v2490_v5, %v307_v7  ;;  %v801_v20 = vsub.f32 %v732_v18, %v800_v19 }
  0x13   : > { %2254 = vmatprep.subr.mxu0 %v2418_v1 }
  0x14   : > { %v345_v8 = vsub.f32 %v343_v4, %v344_v6  ;;  %v385_v11 = vand.u32 4294901760, %v384_v9  ;;  %1645 = vrot.lane.b32.xlu1 %v2418_v1, %s2419_s24  ;;  %v802_v21 = vand.u32 4294901760, %v801_v20 }
  0x16   : > { %v346_v10 = vand.u32 4294901760, %v345_v8  ;;  %v386_v12 = vsub.f32 %v384_v9, %v385_v11  ;;  %v803_v23 = vsub.f32 %v801_v20, %v802_v21 }
  0x18   : > { %2247 = vmatmul.mubr.f32.vlgmr.msra.gmra.mxu0 %v346_v10  ;;  %v387_v14 = vand.u32 4294901760, %v386_v12  ;;  %2103 = vperm.xlu1 %2392, %v2100_v16   ;;  %v804_v26 = vand.u32 4294901760, %v803_v23 }
  0x19   : > { %2255 = vmatpush3.msra.mxu0 %v384_v9  ;;  %2256 = vmatprep.mubr.msk.f32.mxu0 %vm2420_vm1, %v2418_v1 }
  0x1a   : > { %2264 = vmatprep.subr.mxu0 %v2418_v1  ;;  %2250 = vmatpush3.msra.mxu1 %v387_v14 }
  0x1b   : > { %2252 = vmatmul.mubr.f32.vlgmr.msra.gmra.mxu1 %v342_v3  ;;  %2259 = vmatprep.subr.mxu1 %v2418_v1 }
  0x1c   : > { %2257 = vmatmul.mubr.f32.vlgmr.msra.gmra.mxu0 %v343_v4  ;;  %2261 = vmatprep.mubr.msk.f32.mxu1 %vm2420_vm1, %v2418_v1  ;;  %v1265_v4 = vand.u32 4294901760, %v1264_v61 }
  0x1d   : > { %2265 = vmatpush3.msra.mxu0 %v385_v11  ;;  %2266 = vmatprep.mubr.msk.f32.mxu0 %vm2420_vm1, %v2418_v1 }
  0x1e   : > { %2260 = vmatpush3.msra.mxu1 %v307_v7  ;;  %2274 = vmatprep.subr.mxu0 %v2418_v1  ;;  %v1266_v11 = vsub.f32 %v1264_v61, %v1265_v4 }
  0x1f   : > { %2262 = vmatmul.mubr.f32.vlgmr.msra.gmra.mxu1 %v344_v6  ;;  %2269 = vmatprep.subr.mxu1 %v2418_v1 }
  0x20   : > { %2267 = vmatmul.mubr.f32.vlgmr.msra.gmra.mxu0 %v342_v3  ;;  %2270 = vmatpush3.msra.mxu1 %v307_v7  ;;  %v1267_v14 = vand.u32 4294901760, %v1266_v11 }
  0x21   : > { %2276 = vmatprep.mubr.msk.f32.mxu0 %vm2420_vm1, %v2418_v1  ;;  %2271 = vmatprep.mubr.msk.f32.mxu1 %vm2420_vm1, %v2418_v1 }
  0x22   : > { %2279 = vmatprep.subr.mxu1 %v2418_v1 }
  0x23   : > { %2272 = vmatmul.mubr.f32.vlgmr.msra.gmra.mxu1 %v342_v3 }
  0x24   : > { %2281 = vmatprep.mubr.msk.f32.mxu1 %vm2420_vm1, %v2418_v1 }
  0x7f   : > { %v725_v22 = vpop.permute.xlu0 %724 }
  0x83   : > { %v727_v24 = vpop.permute.xlu0 %726 }
  0x84   : > { %v729_v25 = vsel %vm728_vm2, %v725_v22, %v727_v24 }
  0x85   : > { %v765_v27 = vand.u32 4294901760, %v729_v25 }
  0x87   : > { %v842_v28 = vsub.f32 %v729_v25, %v765_v27  ;;  %2275 = vmatpush3.msra.mxu0 %v765_v27 }
  0x88   : > { %2277 = vmatmul.mubr.f32.vlgmr.msra.gmra.mxu0 %v804_v26  ;;  %2284 = vmatprep.subr.mxu0 %v2418_v1 }
  0x89   : > { %v843_v29 = vand.u32 4294901760, %v842_v28  ;;  %2285 = vmatpush3.msra.mxu0 %v842_v28  ;;  %2286 = vmatprep.mubr.msk.f32.mxu0 %vm2420_vm1, %v2418_v1 }
  0x8a   : > { %2294 = vmatprep.subr.mxu0 %v2418_v1 }
  0x8b   : > { %v844_v30 = vsub.f32 %v842_v28, %v843_v29  ;;  %v1184_v9 = vpop.permute.xlu1 %1183 }
  0x8c   : > { %2287 = vmatmul.mubr.f32.vlgmr.msra.gmra.mxu0 %v801_v20  ;;  %v1189_v20 = vld [vmem:[%s2603_s3] sm:$0xff] }
  0x8d   : > { %2295 = vmatpush3.msra.mxu0 %v843_v29  ;;  %v845_v31 = vand.u32 4294901760, %v844_v30  ;;  %2296 = vmatprep.mubr.msk.f32.mxu0 %vm2420_vm1, %v2418_v1 }
  0x8e   : > { %2304 = vmatprep.subr.mxu0 %v2418_v1 }
  0x8f   : > { %2280 = vmatpush3.msra.mxu1 %v845_v31  ;;  %v1646_v26 = vpop.permute.xlu1 %1645 }
  0x90   : > { %2282 = vmatmul.mubr.f32.vlgmr.msra.gmra.mxu1 %v800_v19  ;;  %2289 = vmatprep.subr.mxu1 %v2418_v1 }
  0x91   : > { %2290 = vmatpush3.msra.mxu1 %v765_v27  ;;  %2291 = vmatprep.mubr.msk.f32.mxu1 %vm2420_vm1, %v2418_v1 }
  0x92   : > { %2299 = vmatprep.subr.mxu1 %v2418_v1  ;;  %2297 = vmatmul.mubr.f32.vlgmr.msra.gmra.mxu0 %v800_v19 }
  0x93   : > { %2306 = vmatprep.mubr.msk.f32.mxu0 %vm2420_vm1, %v2418_v1 }
  0x94   : > { %2292 = vmatmul.mubr.f32.vlgmr.msra.gmra.mxu1 %v802_v21  ;;  %v1652_v21 = vsel %vm272_vm0, %v1189_v20, 0 }
  0x95   : > { %2300 = vmatpush3.msra.mxu1 %v765_v27  ;;  %2301 = vmatprep.mubr.msk.f32.mxu1 %vm2420_vm1, %v2418_v1  ;;  %v1720_v22 = vand.u32 4294901760, %v1652_v21 }
  0x96   : > { %2309 = vmatprep.subr.mxu1 %v2418_v1 }
  0x97   : > { %v1721_v23 = vsub.f32 %v1652_v21, %v1720_v22 }
  0x98   : > { %2302 = vmatmul.mubr.f32.vlgmr.msra.gmra.mxu1 %v800_v19 }
  0x99   : > { %2311 = vmatprep.mubr.msk.f32.mxu1 %vm2420_vm1, %v2418_v1  ;;  %v1722_v24 = vand.u32 4294901760, %v1721_v23 }
  0x9b   : > { %v1723_v25 = vsub.f32 %v1721_v23, %v1722_v24 }
  0x9d   : > { %v1724_v29 = vand.u32 4294901760, %v1723_v25 }
  0xd8   : > { %v348_v32 = vpop.f32.mrf.mxu0 }
  0xda   : > { %v2248_v33 = vpop.f32.mrf.mxu0 }
  0xdb   : > { %v424_v35 = vpop.f32.mrf.mxu1 }
  0xdc   : > { %v498_v34 = vpop.f32.mrf.mxu0  ;;  %v425_v37 = vadd.f32 %v424_v35, %v348_v32 }
  0xdd   : > { %v2253_v38 = vpop.f32.mrf.mxu1 }
  0xde   : > { %v2258_v36 = vpop.f32.mrf.mxu0  ;;  %v499_v40 = vadd.f32 %v498_v34, %v425_v37 }
  0xdf   : > { %v572_v41 = vpop.f32.mrf.mxu1 }
  0xe0   : > { %v646_v39 = vpop.f32.mrf.mxu0  ;;  %v573_v43 = vadd.f32 %v572_v41, %v499_v40 }
  0xe1   : > { %v2263_v44 = vpop.f32.mrf.mxu1 }
  0xe2   : > { %v2268_v42 = vpop.f32.mrf.mxu0  ;;  %v647_v45 = vadd.f32 %v646_v39, %v573_v43 }
  0xe3   : > { %v718_v46 = vpop.f32.mrf.mxu1 }
  0xe4   : > { %v719_v47 = vadd.f32 %v718_v46, %v647_v45 }
  0xe5   : > { %v2273_v48 = vpop.f32.mrf.mxu1 }
 0x148   : > { %v806_v49 = vpop.f32.mrf.mxu0 }
 0x149   : > { %v807_v56 = vadd.f32 %v806_v49, %v719_v47 }
 0x14a   : > { %v2278_v51 = vpop.f32.mrf.mxu0 }
 0x14c   : > { %v956_v53 = vpop.f32.mrf.mxu0 }
 0x14e   : > { %v2288_v54 = vpop.f32.mrf.mxu0 }
 0x150   : > { %v882_v57 = vpop.f32.mrf.mxu1 }
 0x151   : > { %v883_v58 = vadd.f32 %v882_v57, %v807_v56 }
 0x152   : > { %v2283_v59 = vpop.f32.mrf.mxu1  ;;  %v1104_v60 = vpop.f32.mrf.mxu0 }
 0x153   : > { %v957_v62 = vadd.f32 %v956_v53, %v883_v58 }
 0x154   : > { %v1030_v63 = vpop.f32.mrf.mxu1  ;;  %v2298_v0 = vpop.f32.mrf.mxu0 }
 0x155   : > { %v1031_v2 = vadd.f32 %v1030_v63, %v957_v62 }
 0x156   : > { %v2293_v3 = vpop.f32.mrf.mxu1 }
 0x157   : > { %v1105_v6 = vadd.f32 %v1104_v60, %v1031_v2 }
 0x158   : > { %v1176_v7 = vpop.f32.mrf.mxu1 }
 0x159   : > { %v1177_v8 = vadd.f32 %v1176_v7, %v1105_v6  ;;  %v2104_v6 = vpop.permute.xlu1 %2103 }
 0x15a   : > { %v2303_v10 = vpop.f32.mrf.mxu1 }
 0x15b   : > { %v1186_v12 = vadd.f32 %v1184_v9, %v1177_v8 }
 0x15d   : > { %v1187_v13 = vmax.f32 %v1186_v12, 0.0 }
 0x15f   : > { %1647 = vrot.lane.b32.xlu0 %v1187_v13, %s2419_s24  ;;  %v1228_v15 = vand.u32 4294901760, %v1187_v13 }
 0x161   : > { %2305 = vmatpush3.msra.mxu0 %v1228_v15  ;;  %v1305_v16 = vsub.f32 %v1187_v13, %v1228_v15 }
 0x162   : > { %2307 = vmatmul.mubr.f32.vlgmr.msra.gmra.mxu0 %v1267_v14  ;;  %2314 = vmatprep.subr.mxu0 %v2418_v1 }
 0x163   : > { %2315 = vmatpush3.msra.mxu0 %v1305_v16  ;;  %2316 = vmatprep.mubr.msk.f32.mxu0 %vm2420_vm1, %v2418_v1  ;;  %v1306_v17 = vand.u32 4294901760, %v1305_v16 }
 0x164   : > { %2324 = vmatprep.subr.mxu0 %v2418_v1 }
 0x165   : > { %v1307_v18 = vsub.f32 %v1305_v16, %v1306_v17 }
 0x166   : > { %2317 = vmatmul.mubr.f32.vlgmr.msra.gmra.mxu0 %v1264_v61 }
 0x167   : > { %2325 = vmatpush3.msra.mxu0 %v1306_v17  ;;  %v1308_v19 = vand.u32 4294901760, %v1307_v18  ;;  %2326 = vmatprep.mubr.msk.f32.mxu0 %vm2420_vm1, %v2418_v1 }
 0x168   : > { %2334 = vmatprep.subr.mxu0 %v2418_v1 }
 0x169   : > { %2310 = vmatpush3.msra.mxu1 %v1308_v19 }
 0x16a   : > { %2312 = vmatmul.mubr.f32.vlgmr.msra.gmra.mxu1 %v1263_v55  ;;  %2319 = vmatprep.subr.mxu1 %v2418_v1 }
 0x16b   : > { %2320 = vmatpush3.msra.mxu1 %v1228_v15  ;;  %2321 = vmatprep.mubr.msk.f32.mxu1 %vm2420_vm1, %v2418_v1 }
 0x16c   : > { %2329 = vmatprep.subr.mxu1 %v2418_v1  ;;  %2327 = vmatmul.mubr.f32.vlgmr.msra.gmra.mxu0 %v1263_v55 }
 0x16d   : > { %2336 = vmatprep.mubr.msk.f32.mxu0 %vm2420_vm1, %v2418_v1 }
 0x16e   : > { %2322 = vmatmul.mubr.f32.vlgmr.msra.gmra.mxu1 %v1265_v4 }
 0x16f   : > { %2330 = vmatpush3.msra.mxu1 %v1228_v15  ;;  %2331 = vmatprep.mubr.msk.f32.mxu1 %vm2420_vm1, %v2418_v1 }
 0x170   : > { %2339 = vmatprep.subr.mxu1 %v2418_v1 }
 0x172   : > { %2332 = vmatmul.mubr.f32.vlgmr.msra.gmra.mxu1 %v1263_v55 }
 0x173   : > { %2341 = vmatprep.mubr.msk.f32.mxu1 %vm2420_vm1, %v2418_v1 }
 0x1d1   : > { %v1648_v27 = vpop.permute.xlu0 %1647 }
 0x1d2   : > { %v1649_v28 = vsel %vm728_vm2, %v1646_v26, %v1648_v27 }
 0x1d3   : > { %v1685_v30 = vand.u32 4294901760, %v1649_v28 }
 0x1d5   : > { %v1762_v31 = vsub.f32 %v1649_v28, %v1685_v30  ;;  %2335 = vmatpush3.msra.mxu0 %v1685_v30 }
 0x1d6   : > { %2337 = vmatmul.mubr.f32.vlgmr.msra.gmra.mxu0 %v1724_v29  ;;  %2344 = vmatprep.subr.mxu0 %v2418_v1 }
 0x1d7   : > { %v1763_v32 = vand.u32 4294901760, %v1762_v31  ;;  %2345 = vmatpush3.msra.mxu0 %v1762_v31  ;;  %2346 = vmatprep.mubr.msk.f32.mxu0 %vm2420_vm1, %v2418_v1 }
 0x1d8   : > { %2354 = vmatprep.subr.mxu0 %v2418_v1 }
 0x1d9   : > { %v1764_v33 = vsub.f32 %v1762_v31, %v1763_v32 }
 0x1da   : > { %2347 = vmatmul.mubr.f32.vlgmr.msra.gmra.mxu0 %v1721_v23 }
 0x1db   : > { %2355 = vmatpush3.msra.mxu0 %v1763_v32  ;;  %v1765_v34 = vand.u32 4294901760, %v1764_v33  ;;  %2356 = vmatprep.mubr.msk.f32.mxu0 %vm2420_vm1, %v2418_v1 }
 0x1dd   : > { %2340 = vmatpush3.msra.mxu1 %v1765_v34 }
 0x1de   : > { %2342 = vmatmul.mubr.f32.vlgmr.msra.gmra.mxu1 %v1720_v22  ;;  %2349 = vmatprep.subr.mxu1 %v2418_v1 }
 0x1df   : > { %2350 = vmatpush3.msra.mxu1 %v1685_v30  ;;  %2351 = vmatprep.mubr.msk.f32.mxu1 %vm2420_vm1, %v2418_v1 }
 0x1e0   : > { %2359 = vmatprep.subr.mxu1 %v2418_v1  ;;  %2357 = vmatmul.mubr.f32.vlgmr.msra.gmra.mxu0 %v1720_v22 }
 0x1e2   : > { %2352 = vmatmul.mubr.f32.vlgmr.msra.gmra.mxu1 %v1722_v24 }
 0x1e3   : > { %2360 = vmatpush3.msra.mxu1 %v1685_v30  ;;  %2361 = vmatprep.mubr.msk.f32.mxu1 %vm2420_vm1, %v2418_v1 }
 0x1e6   : > { %2362 = vmatmul.mubr.f32.vlgmr.msra.gmra.mxu1 %v1720_v22 }
 0x222   : > { %v1269_v35 = vpop.f32.mrf.mxu0 }
 0x224   : > { %v2308_v36 = vpop.f32.mrf.mxu0 }
 0x226   : > { %v1419_v37 = vpop.f32.mrf.mxu0 }
 0x228   : > { %v2318_v38 = vpop.f32.mrf.mxu0 }
 0x22a   : > { %v1345_v39 = vpop.f32.mrf.mxu1 }
 0x22b   : > { %v1346_v40 = vadd.f32 %v1345_v39, %v1269_v35 }
 0x22c   : > { %v2313_v41 = vpop.f32.mrf.mxu1  ;;  %v1567_v42 = vpop.f32.mrf.mxu0 }
 0x22d   : > { %v1420_v43 = vadd.f32 %v1419_v37, %v1346_v40 }
 0x22e   : > { %v1493_v44 = vpop.f32.mrf.mxu1  ;;  %v2328_v45 = vpop.f32.mrf.mxu0 }
 0x22f   : > { %v1494_v46 = vadd.f32 %v1493_v44, %v1420_v43 }
 0x230   : > { %v2323_v47 = vpop.f32.mrf.mxu1 }
 0x231   : > { %v1568_v48 = vadd.f32 %v1567_v42, %v1494_v46 }
 0x232   : > { %v1639_v49 = vpop.f32.mrf.mxu1 }
 0x233   : > { %v1640_v50 = vadd.f32 %v1639_v49, %v1568_v48 }
 0x234   : > { %v2333_v51 = vpop.f32.mrf.mxu1 }
 0x296   : > { %v1726_v52 = vpop.f32.mrf.mxu0 }
 0x297   : > { %v1727_v55 = vadd.f32 %v1726_v52, %v1640_v50 }
 0x298   : > { %v2338_v1 = vpop.f32.mrf.mxu0 }
 0x29a   : > { %v1876_v53 = vpop.f32.mrf.mxu0 }
 0x29c   : > { %v2348_v54 = vpop.f32.mrf.mxu0 }
 0x29e   : > { %v1802_v56 = vpop.f32.mrf.mxu1 }
 0x29f   : > { %v1803_v57 = vadd.f32 %v1802_v56, %v1727_v55 }
 0x2a0   : > { %v2343_v58 = vpop.f32.mrf.mxu1  ;;  %v2024_v59 = vpop.f32.mrf.mxu0 }
 0x2a1   : > { %v1877_v60 = vadd.f32 %v1876_v53, %v1803_v57 }
 0x2a2   : > { %v1950_v61 = vpop.f32.mrf.mxu1  ;;  %v2358_v62 = vpop.f32.mrf.mxu0 }
 0x2a3   : > { %v1951_v63 = vadd.f32 %v1950_v61, %v1877_v60 }
 0x2a4   : > { %v2353_v0 = vpop.f32.mrf.mxu1 }
 0x2a5   : > { %v2025_v2 = vadd.f32 %v2024_v59, %v1951_v63 }
 0x2a6   : > { %v2096_v3 = vpop.f32.mrf.mxu1 }
 0x2a7   : > { %v2097_v4 = vadd.f32 %v2096_v3, %v2025_v2 }
 0x2a8   : > { %v2363_v7 = vpop.f32.mrf.mxu1 }
 0x2a9   : > { %v2106_v8 = vadd.f32 %v2104_v6, %v2097_v4 }
 0x2ab   : > { %v2107_v9 = vmax.f32 %v2106_v8, 0.0 }
 0x2ad   : > { %v2108_v10 = vadd.f32 %v2107_v9, %v2490_v5 }
 0x2af   : > { %v2109_v11 = vmax.f32 %v2108_v10, 0.0 }
 0x2b1   : > { %2110 = vst [vmem:[%s250_s16] sm:$0xff] %v2109_v11 }
 0x2b2 PF: > { %s15_s20 = sadd.s32 1, %s2416_s20   ;;  %s2606_s18 = smov %s2412_s19 }
 0x2b3   : > { %p12_p5 = scmp.ge.s32.totalorder %s15_s20, 4   ;;  %s2607_s19 = smov %s2609_s21 }
 0x2b5   :  { %14 = sbr.rel (!%p12_p5) target bundleno = 2 (0x2), region = 80 }

// kernel: _lambda_.5
= control target key start
LH: loop header
LB: loop body
LE: loop exit
PB: predicated region body
PF: predicated region fallthrough
CT: control target
= control target key end

     0   :  { %12 = vsyncpa [#allocation5], 0  ;;  %s3789_s0 = inlined_call_operand.vmem [shape: f32[2,8,128], index: 0, kind: input, shape index: {}]   ;;  %s3790_s1 = inlined_call_operand.vmem [shape: f32[2,16,8], index: 1, kind: input, shape index: {}]   ;;  %s3791_s2 = inlined_call_operand.vmem [shape: f32[16,1], index: 2, kind: input, shape index: {}]   ;;  %s3792_s3 = inlined_call_operand.vmem [shape: f32[2,16,16], index: 3, kind: input, shape index: {}]   ;;  %s3793_s4 = inlined_call_operand.vmem [shape: f32[16,1], index: 4, kind: input, shape index: {}]   ;;  %s3794_s5 = inlined_call_operand.vmem [shape: f32[16,8], index: 5, kind: input, shape index: {}]   ;;  %s3795_s6 = inlined_call_operand.vmem [shape: f32[16,1], index: 6, kind: input, shape index: {}]   ;;  %s3796_s7 = inlined_call_operand.hbm [shape: f32[2,16,128], index: 7, kind: output, shape index: {}]  }
   0x1   :  { %14 = vsyncpa [#allocation5 + $0x1], 0  ;;  %s3490_s24 = smov 0   ;;  %s3492_s25 = smov 0  }
   0x2   :  { %s3494_s26 = smov 0   ;;  %s3496_s27 = smov 0  }
   0x3   :  { %s3498_s28 = smov 0   ;;  %s3500_s29 = smov 0  }
   0x4 LB: > { %s3006_s30 = sadd.s32 4294967295, %s3442_s29   ;;  %s3007_s8 = sadd.s32 4294967294, %s3442_s29   ;;  %s3442_s29 = sphi %s3500_s29, %s20_s29   ;;  %s3438_s28 = sphi %s3498_s28, %s3803_s28   ;;  %s3434_s27 = sphi %s3496_s27, %s3802_s27   ;;  %s3430_s26 = sphi %s3494_s26, %s3801_s26   ;;  %s3426_s25 = sphi %s3492_s25, %s3800_s25   ;;  %s3422_s24 = sphi %s3490_s24, %s3799_s24  }
   0x5   : > { %s32_s9 = sadd.s32 1, %s3438_s28  ;;  %s195_s10 = sadd.s32 1, %s3430_s26 }
   0x6   : > { %p34_p0 = scmp.ge.s32.totalorder %s32_s9, 2  ;;  %p205_p1 = scmp.ne.s32.totalorder %s3430_s26, %s3426_s25 }
   0x7   : > { %p206_p2 = scmp.eq.s32.totalorder %s3006_s30, 1  ;;  %p211_p3 = scmp.ne.s32.totalorder %s3426_s25, %s3422_s24 }
   0x8   : > { %s3805_s9 = smov (%p34_p0, %s32_s9), 0  ;;  %p212_p5 = scmp.eq.s32.totalorder %s3007_s8, 1 }
   0x9   : > { %p3530_p4 = por %p206_p2, %p205_p1  ;;  %s190_s12 = ssub.s32 %s3438_s28, %s3805_s9 }
   0xa   : > { %p3010_p6 = scmp.ge.s32.totalorder %s3442_s29, 1  ;;  %p193_p7 = scmp.eq.s32.totalorder %s190_s12, 0 }
   0xb   : > { %p3537_p8 = por %p212_p5, %p211_p3  ;;  %p258_p9 = scmp.lt.s32.totalorder %s3442_s29, 3 }
   0xc   : > { %s3543_s14 = scalar_select %p193_p7, %s3430_s26, %s195_s10  }
   0xd   : > { %p259_p10 = pnand %p3010_p6, %p258_p9 }
   0xe   : > { %p292_p11 = scmp.lt.s32.totalorder (!%p259_p10), %s3434_s27, 1  ;;  %s3445_s19 = smov (!%p259_p10), 4  }
   0xf   : > { %262 = sbr.rel (%p259_p10) target bundleno = 727 (0x2d7), region = 48  ;;  %s289_s15 = sand.u32 (!%p259_p10), 1, %s3426_s25  }
  0x10   : > { %s3011_s16 = sshll.u32 (!%p259_p10), %s289_s15, 4  ;;  %s3022_s18 = sshll.u32 (!%p259_p10), %s3434_s27, 8 }
  0x11   : > { %s291_s17 = scalar_lea.vmem (!%p259_p10), [#allocation4], %s3011_s16 }
  0x14   : > { %v3013_v0 = vld [vmem:[%s3790_s1 + $0x10] sm:$0xff]  ;;  %vm325_vm0 = vcmask 64512   ;;  %v3014_v1 = vld [vmem:[%s3790_s1 + $0x18] sm:$0xff]  ;;  %v3444_v2 = vmov 0.0   ;;  %v318_v5 = vld [vmem:[%s3790_s1] sm:$0xff]  ;;  %s293_s22 = scalar_select %p292_p11, %s3434_s27, 1 }
  0x15   : > { %823 = vrot.lane.b32.xlu0 %v3444_v2, %s3445_s19  ;;  %v327_v3 = vsel %vm325_vm0, %v3013_v0, 0  ;;  %v330_v4 = vsel %vm325_vm0, %v3014_v1, 0  ;;  %v831_v8 = vsel %vm325_vm0, %v318_v5, 0  ;;  %v3446_v27 = vmov 0   ;;  %v1326_v29 = vld [vmem:[%s3791_s2 + $0x8] sm:$0xff]  ;;  %v1325_v30 = vld [vmem:[%s3791_s2] sm:$0xff] }
  0x16   : > { %v398_v6 = vand.u32 4294901760, %v327_v3  ;;  %v408_v7 = vand.u32 4294901760, %v330_v4  ;;  %v3560_v9 = vand.u32 4294901760, %v831_v8  ;;  %s3012_s23 = sshll.u32 %s293_s22, 3  ;;  %3359 = vset.pattern.permute.xlu1 %v3446_v27  ;;  %3365 = vset.pattern.permute.xlu0 %v3446_v27  ;;  %v319_v31 = vld [vmem:[%s3790_s1 + $0x8] sm:$0xff]  ;;  %vm827_vm1 = vcmask 31744   ;;  %s3740_s22 = scalar_lea.hbm %s3796_s7, %s3022_s18 }
  0x17   : > { %s298_s10 = scalar_lea.vmem %s3789_s0, %s3012_s23  ;;  %1334 = vperm.xlu1 %3359, %v1326_v29   ;;  %v834_v32 = vsel %vm325_vm0, %v319_v31, 0  ;;  %v3015_v46 = vld [vmem:[%s3792_s3 + $0x10] sm:$0xff]  ;;  %vm1352_vm2 = vcmask 130048   ;;  %s3744_s23 = scalar_lea.sflag [#allocation5], %s289_s15 }
  0x18   : > { %v399_v10 = vsub.f32 %v327_v3, %v398_v6  ;;  %v409_v11 = vsub.f32 %v330_v4, %v408_v7  ;;  %3132 = vmatprep.mubr.f32.mxu1 %v398_v6  ;;  %v316_v12 = vld [vmem:[%s298_s10] sm:$0xff]  ;;  %v3566_v15 = vsub.f32 %v831_v8, %v3560_v9  ;;  %v912_v33 = vand.u32 4294901760, %v834_v32  ;;  %s3447_s27 = smov [#allocation4]  }
  0x19   : > { %825 = vrot.lane.b32.xlu0 %v316_v12, %s3445_s19  ;;  %v3569_v16 = vand.u32 4294901760, %v316_v12  ;;  %v1354_v47 = vsel %vm1352_vm2, %v3015_v46, 0  ;;  %s3370_s8 = sshll.u32 %s3447_s27, 4  ;;  %s3371_s8 = int_to_ptr.vmem [resolvable:$false] %s3370_s8 }
  0x1a   : > { %v400_v13 = vand.u32 4294901760, %v399_v10  ;;  %v410_v14 = vand.u32 4294901760, %v409_v11  ;;  %v904_v22 = vand.u32 4294901760, %v3566_v15  ;;  %v913_v34 = vsub.f32 %v834_v32, %v912_v33  ;;  %s3372_s10 = scalar_lea.vmem %s3371_s8, 512 }
  0x1b   : > { %v3572_v19 = vsub.f32 %v316_v12, %v3569_v16  ;;  %3125 = vmatprep.subr.mxu0 %v3569_v16  ;;  %1329 = vperm.xlu1 %3359, %v1325_v30   ;;  %v3619_v48 = vand.u32 4294901760, %v1354_v47  ;;  %v3016_v12 = vld [vmem:[%s3792_s3 + $0x18] sm:$0xff] }
  0x1c   : > { %v401_v17 = vsub.f32 %v399_v10, %v400_v13  ;;  %v411_v18 = vsub.f32 %v409_v11, %v410_v14  ;;  %3126 = vmatpush3.msra.mxu0 %v3569_v16  ;;  %v905_v25 = vsub.f32 %v3566_v15, %v904_v22  ;;  %v914_v36 = vand.u32 4294901760, %v913_v34 }
  0x1d   : > { %3135 = vmatprep.subr.mxu0 %v3572_v19  ;;  %v3579_v23 = vand.u32 4294901760, %v3572_v19  ;;  %3361 = vrot.lane.b32.xlu0 %v3444_v2, %s3445_s19  ;;  %v3622_v49 = vsub.f32 %v1354_v47, %v3619_v48 }
  0x1e   : > { %v402_v20 = vand.u32 4294901760, %v401_v17  ;;  %v412_v21 = vand.u32 4294901760, %v411_v18  ;;  %v906_v28 = vand.u32 4294901760, %v905_v25  ;;  %v915_v37 = vsub.f32 %v913_v34, %v914_v36 }
  0x1f   : > { %v452_v24 = vsub.f32 %v3572_v19, %v3579_v23  ;;  %v1428_v50 = vand.u32 4294901760, %v3622_v49 }
  0x20   : > { %3127 = vmatprep.mubr.f32.mxu0 %v402_v20  ;;  %v916_v41 = vand.u32 4294901760, %v915_v37 }
  0x21   : > { %3128 = vmatmul.mubr.f32.vlgmr.msra.gmra.mxu0 %v412_v21  ;;  %v3588_v26 = vand.u32 4294901760, %v452_v24  ;;  %v1429_v51 = vsub.f32 %v3622_v49, %v1428_v50 }
  0x22   : > { %3136 = vmatpush3.msra.mxu0 %v3572_v19  ;;  %3137 = vmatprep.mubr.f32.mxu0 %v399_v10 }
  0x23   : > { %3145 = vmatprep.subr.mxu0 %v3579_v23  ;;  %3130 = vmatprep.subr.mxu1 %v3588_v26  ;;  %v1430_v52 = vand.u32 4294901760, %v1429_v51 }
  0x24   : > { %3131 = vmatpush3.msra.mxu1 %v3588_v26 }
  0x25   : > { %3138 = vmatmul.mubr.f32.vlgmr.msra.gmra.mxu0 %v409_v11  ;;  %3133 = vmatmul.mubr.f32.vlgmr.msra.gmra.mxu1 %v408_v7 }
  0x26   : > { %3146 = vmatpush3.msra.mxu0 %v3579_v23  ;;  %3147 = vmatprep.mubr.f32.mxu0 %v398_v6 }
  0x27   : > { %3140 = vmatprep.subr.mxu1 %v3569_v16  ;;  %3142 = vmatprep.mubr.f32.mxu1 %v400_v13 }
  0x28   : > { %3141 = vmatpush3.msra.mxu1 %v3569_v16 }
  0x29   : > { %3148 = vmatmul.mubr.f32.vlgmr.msra.gmra.mxu0 %v408_v7  ;;  %3150 = vmatprep.subr.mxu1 %v3569_v16 }
  0x2a   : > { %3157 = vmatprep.mubr.f32.mxu0 %v906_v28  ;;  %3143 = vmatmul.mubr.f32.vlgmr.msra.gmra.mxu1 %v410_v14 }
  0x2b   : > { %3151 = vmatpush3.msra.mxu1 %v3569_v16  ;;  %3152 = vmatprep.mubr.f32.mxu1 %v398_v6 }
  0x2e   : > { %3153 = vmatmul.mubr.f32.vlgmr.msra.gmra.mxu1 %v408_v7 }
  0x2f   : > { %3162 = vmatprep.mubr.f32.mxu1 %v3560_v9 }
  0x87   : > { %v824_v35 = vpop.permute.xlu0 %823 }
  0x8b   : > { %v826_v38 = vpop.permute.xlu0 %825 }
  0x8c   : > { %v828_v39 = vsel %vm827_vm1, %v824_v35, %v826_v38 }
  0x8d   : > { %v867_v40 = vand.u32 4294901760, %v828_v39 }
  0x8f   : > { %v954_v42 = vsub.f32 %v828_v39, %v867_v40  ;;  %3155 = vmatprep.subr.mxu0 %v867_v40 }
  0x90   : > { %3156 = vmatpush3.msra.mxu0 %v867_v40 }
  0x91   : > { %3158 = vmatmul.mubr.f32.vlgmr.msra.gmra.mxu0 %v916_v41  ;;  %3165 = vmatprep.subr.mxu0 %v954_v42  ;;  %v955_v43 = vand.u32 4294901760, %v954_v42 }
  0x92   : > { %3166 = vmatpush3.msra.mxu0 %v954_v42  ;;  %3167 = vmatprep.mubr.f32.mxu0 %v3566_v15  ;;  %v1357_v15 = vsel %vm1352_vm2, %v3016_v12, 0 }
  0x93   : > { %3175 = vmatprep.subr.mxu0 %v955_v43  ;;  %v956_v44 = vsub.f32 %v954_v42, %v955_v43  ;;  %v3633_v24 = vand.u32 4294901760, %v1357_v15 }
  0x95   : > { %3168 = vmatmul.mubr.f32.vlgmr.msra.gmra.mxu0 %v913_v34  ;;  %v957_v45 = vand.u32 4294901760, %v956_v44  ;;  %v1335_v34 = vpop.permute.xlu1 %1334 }
  0x96   : > { %3176 = vmatpush3.msra.mxu0 %v955_v43  ;;  %3177 = vmatprep.mubr.f32.mxu0 %v3560_v9  ;;  %v1343_v43 = vld [vmem:[%s3792_s3] sm:$0xff] }
  0x97   : > { %3160 = vmatprep.subr.mxu1 %v957_v45  ;;  %v1878_v51 = vsel %vm1352_vm2, %v1343_v43, 0 }
  0x98   : > { %3161 = vmatpush3.msra.mxu1 %v957_v45 }
  0x99   : > { %3163 = vmatmul.mubr.f32.vlgmr.msra.gmra.mxu1 %v912_v33  ;;  %3170 = vmatprep.subr.mxu1 %v867_v40  ;;  %v1330_v47 = vpop.permute.xlu1 %1329 }
  0x9a   : > { %3171 = vmatpush3.msra.mxu1 %v867_v40  ;;  %3172 = vmatprep.mubr.f32.mxu1 %v904_v22 }
  0x9b   : > { %3180 = vmatprep.subr.mxu1 %v867_v40  ;;  %3178 = vmatmul.mubr.f32.vlgmr.msra.gmra.mxu0 %v912_v33 }
  0x9c   : > { %3189 = vmatprep.mubr.f32.mxu0 %v1430_v52 }
  0x9d   : > { %3173 = vmatmul.mubr.f32.vlgmr.msra.gmra.mxu1 %v914_v36 }
  0x9e   : > { %3181 = vmatpush3.msra.mxu1 %v867_v40  ;;  %3182 = vmatprep.mubr.f32.mxu1 %v3560_v9 }
  0xa1   : > { %3183 = vmatmul.mubr.f32.vlgmr.msra.gmra.mxu1 %v912_v33  ;;  %v3636_v33 = vsub.f32 %v1357_v15, %v3633_v24 }
  0xa2   : > { %3196 = vmatprep.mubr.f32.mxu1 %v3619_v48 }
  0xa3   : > { %v1438_v42 = vand.u32 4294901760, %v3636_v33 }
  0xe1   : > { %v3129_v53 = vpop.f32.mrf.mxu0 }
  0xe3   : > { %v404_v54 = vpop.f32.mrf.mxu0 }
  0xe5   : > { %v3134_v55 = vpop.f32.mrf.mxu1  ;;  %v3139_v56 = vpop.f32.mrf.mxu0 }
  0xe6   : > { %v497_v58 = vadd.f32 %v3134_v55, %v3129_v53 }
  0xe7   : > { %v490_v57 = vpop.f32.mrf.mxu1  ;;  %v570_v59 = vpop.f32.mrf.mxu0 }
  0xe8   : > { %v491_v60 = vadd.f32 %v490_v57, %v404_v54  ;;  %v578_v62 = vadd.f32 %v3139_v56, %v497_v58  ;;  %v1439_v54 = vsub.f32 %v3636_v33, %v1438_v42  ;;  %v3645_v57 = vand.u32 4294901760, %v1878_v51  ;;  %v2403_v58 = vld [vmem:[%s3795_s6] sm:$0xff] }
  0xe9   : > { %v3149_v63 = vpop.f32.mrf.mxu0 }
  0xea   : > { %v3144_v61 = vpop.f32.mrf.mxu1  ;;  %v571_v0 = vadd.f32 %v570_v59, %v491_v60 }
  0xeb   : > { %v660_v2 = vadd.f32 %v3144_v61, %v578_v62  ;;  %v733_v3 = vpop.f32.mrf.mxu0  ;;  %v1440_v61 = vand.u32 4294901760, %v1439_v54 }
  0xec   : > { %v651_v1 = vpop.f32.mrf.mxu1 }
  0xed   : > { %v652_v4 = vadd.f32 %v651_v1, %v571_v0  ;;  %v740_v6 = vadd.f32 %v3149_v63, %v660_v2  ;;  %v3652_v0 = vsub.f32 %v1878_v51, %v3645_v57  ;;  %v2385_v1 = vld [vmem:[%s3793_s4] sm:$0xff] }
  0xee   : > { %v3154_v5 = vpop.f32.mrf.mxu1 }
  0xef   : > { %v734_v8 = vadd.f32 %v733_v3, %v652_v4  ;;  %v818_v11 = vadd.f32 %v3154_v5, %v740_v6  ;;  %v1952_v6 = vand.u32 4294901760, %v3652_v0 }
  0xf0   : > { %v811_v9 = vpop.f32.mrf.mxu1 }
  0xf1   : > { %v812_v14 = vadd.f32 %v811_v9, %v734_v8  ;;  %v1953_v9 = vsub.f32 %v3652_v0, %v1952_v6 }
 0x151   : > { %v3159_v7 = vpop.f32.mrf.mxu0 }
 0x152   : > { %v919_v17 = vadd.f32 %v3159_v7, %v818_v11  ;;  %v2386_v7 = vld [vmem:[%s3793_s4 + $0x8] sm:$0xff] }
 0x153   : > { %v908_v10 = vpop.f32.mrf.mxu0 }
 0x154   : > { %v909_v21 = vadd.f32 %v908_v10, %v812_v14  ;;  %v1954_v10 = vand.u32 4294901760, %v1953_v9  ;;  %v2401_v14 = vld [vmem:[%s3794_s5] sm:$0xff] }
 0x155   : > { %v3169_v13 = vpop.f32.mrf.mxu0 }
 0x157   : > { %v1074_v20 = vpop.f32.mrf.mxu0 }
 0x159   : > { %v3164_v18 = vpop.f32.mrf.mxu1 }
 0x15a   : > { %v1001_v22 = vadd.f32 %v3164_v18, %v919_v17  ;;  %v2402_v18 = vld [vmem:[%s3794_s5 + $0x8] sm:$0xff] }
 0x15b   : > { %v994_v25 = vpop.f32.mrf.mxu1  ;;  %v3179_v30 = vpop.f32.mrf.mxu0 }
 0x15c   : > { %v995_v27 = vadd.f32 %v994_v25, %v909_v21  ;;  %v1082_v28 = vadd.f32 %v3169_v13, %v1001_v22  ;;  %v3362_v13 = vpop.permute.xlu0 %3361 }
 0x15d   : > { %v3174_v29 = vpop.f32.mrf.mxu1  ;;  %v1237_v38 = vpop.f32.mrf.mxu0  ;;  %v3363_v17 = vunpack.i.l.bf16 %v3362_v13  ;;  %v3364_v25 = vunpack.i.h.bf16 %v3362_v13 }
 0x15e   : > { %v1075_v31 = vadd.f32 %v1074_v20, %v995_v27  ;;  %v1164_v32 = vadd.f32 %v3174_v29, %v1082_v28  ;;  %v2416_v20 = vsel %vm325_vm0, %v2401_v14, 0 }
 0x15f   : > { %v1155_v35 = vpop.f32.mrf.mxu1  ;;  %v3697_v28 = vand.u32 4294901760, %v2416_v20 }
 0x160   : > { %v1156_v36 = vadd.f32 %v1155_v35, %v1075_v31  ;;  %v1244_v37 = vadd.f32 %v3179_v30, %v1164_v32 }
 0x161   : > { %v3184_v39 = vpop.f32.mrf.mxu1 }
 0x162   : > { %v1238_v40 = vadd.f32 %v1237_v38, %v1156_v36  ;;  %v1322_v41 = vadd.f32 %v3184_v39, %v1244_v37  ;;  %v2488_v36 = vsub.f32 %v2416_v20, %v3697_v28 }
 0x163   : > { %v1315_v44 = vpop.f32.mrf.mxu1 }
 0x164   : > { %v1338_v45 = vadd.f32 %v1335_v34, %v1322_v41  ;;  %v1316_v46 = vadd.f32 %v1315_v44, %v1238_v40 }
 0x166   : > { %v1340_v52 = vmax.f32 %v1338_v45, 0.0  ;;  %v1337_v53 = vadd.f32 %v1330_v47, %v1316_v46 }
 0x168   : > { %v1388_v55 = vand.u32 4294901760, %v1340_v52  ;;  %v1339_v56 = vmax.f32 %v1337_v53, 0.0  ;;  %1871 = vrot.lane.b32.xlu1 %v1340_v52, %s3445_s19 }
 0x16a   : > { %v1391_v59 = vand.u32 4294901760, %v1339_v56  ;;  %3185 = vmatprep.subr.mxu0 %v1388_v55  ;;  %1867 = vrot.lane.b32.xlu0 %v1339_v56, %s3445_s19  ;;  %v1476_v60 = vsub.f32 %v1340_v52, %v1388_v55  ;;  %s2931_s19 = sshll.u32 %s291_s17, 4  ;;  %s3735_s19 = int_to_ptr.vmem [resolvable:$true] %s2931_s19 }
 0x16b   : > { %3186 = vmatpush3.msra.mxu0 %v1388_v55  ;;  %s3366_s30 = scalar_lea.vmem %s3735_s19, 256  ;;  %p3373_p1 = scmp.lt.s32.totalorder %s3735_s19, %s3371_s8 }
 0x16c   : > { %2407 = vperm.xlu1 %3359, %v2403_v58   ;;  %3187 = vmatprep.subr.mxu0 %v1391_v59  ;;  %v1483_v62 = vsub.f32 %v1339_v56, %v1391_v59  ;;  %v1477_v63 = vand.u32 4294901760, %v1476_v60  ;;  %p3367_p12 = scmp.ne.s32.totalorder %s3735_s19, %s3366_s30  ;;  %p3374_p2 = scmp.lt.s32.totalorder %s3372_s10, %s3366_s30 }
 0x16d   : > { %3188 = vmatpush3.msra.mxu0 %v1391_v59 }
 0x16e   : > { %3199 = vmatprep.subr.mxu0 %v1476_v60  ;;  %3190 = vmatmul.mubr.f32.vlgmr.msra.gmra.mxu0 %v1440_v61  ;;  %v1478_v2 = vsub.f32 %v1476_v60, %v1477_v63  ;;  %v1484_v3 = vand.u32 4294901760, %v1483_v62  ;;  %p3368_p13 = pnand %p3367_p12, %p3530_p4  ;;  %p3375_p3 = por %p3374_p2, %p3373_p1 }
 0x16f   : > { %3200 = vmatpush3.msra.mxu0 %v1476_v60  ;;  %3203 = vmatprep.mubr.f32.mxu0 %v3622_v49  ;;  %v2404_v49 = vld [vmem:[%s3795_s6 + $0x8] sm:$0xff] }
 0x170   : > { %2389 = vperm.xlu1 %3359, %v2385_v1   ;;  %3201 = vmatprep.subr.mxu0 %v1483_v62  ;;  %v1479_v4 = vand.u32 4294901760, %v1478_v2  ;;  %v1485_v5 = vsub.f32 %v1483_v62, %v1484_v3  ;;  %p3369_p0 = pneg %p3368_p13 }
 0x171   : > { %3202 = vmatpush3.msra.mxu0 %v1483_v62  ;;  %2412 = vperm.xlu0 %3365, %v2404_v49  }
 0x172   : > { %3192 = vmatprep.subr.mxu1 %v1479_v4  ;;  %3213 = vmatprep.subr.mxu0 %v1477_v63  ;;  %v1486_v8 = vand.u32 4294901760, %v1485_v5  ;;  %p3376_p5 = pnand %p3375_p3, %p3369_p0 }
 0x173   : > { %3193 = vmatpush3.msra.mxu1 %v1479_v4  ;;  %3204 = vmatmul.mubr.f32.vlgmr.msra.gmra.mxu0 %v3636_v33 }
 0x174   : > { %3214 = vmatpush3.msra.mxu0 %v1477_v63  ;;  %2394 = vperm.xlu1 %3359, %v2386_v7  }
 0x175   : > { %3194 = vmatprep.subr.mxu1 %v1486_v8  ;;  %3215 = vmatprep.subr.mxu0 %v1484_v3 }
 0x176   : > { %3195 = vmatpush3.msra.mxu1 %v1486_v8  ;;  %3216 = vmatpush3.msra.mxu0 %v1484_v3 }
 0x177   : > { %3206 = vmatprep.subr.mxu1 %v1388_v55  ;;  %3197 = vmatmul.mubr.f32.vlgmr.msra.gmra.mxu1 %v3633_v24 }
 0x178   : > { %3207 = vmatpush3.msra.mxu1 %v1388_v55  ;;  %3210 = vmatprep.mubr.f32.mxu1 %v1428_v50  ;;  %v1344_v50 = vld [vmem:[%s3792_s3 + $0x8] sm:$0xff] }
 0x179   : > { %3208 = vmatprep.subr.mxu1 %v1391_v59  ;;  %3217 = vmatprep.mubr.f32.mxu0 %v3619_v48  ;;  %v1881_v11 = vsel %vm1352_vm2, %v1344_v50, 0 }
 0x17a   : > { %3209 = vmatpush3.msra.mxu1 %v1391_v59  ;;  %3218 = vmatmul.mubr.f32.vlgmr.msra.gmra.mxu0 %v3633_v24  ;;  %v3681_v12 = vand.u32 4294901760, %v1881_v11 }
 0x17b   : > { %3220 = vmatprep.subr.mxu1 %v1388_v55  ;;  %3211 = vmatmul.mubr.f32.vlgmr.msra.gmra.mxu1 %v1438_v42  ;;  %v2489_v42 = vand.u32 4294901760, %v2488_v36 }
 0x17c   : > { %3221 = vmatpush3.msra.mxu1 %v1388_v55  ;;  %3231 = vmatprep.mubr.f32.mxu0 %v1954_v10 }
 0x17d   : > { %3222 = vmatprep.subr.mxu1 %v1391_v59  ;;  %3224 = vmatprep.mubr.f32.mxu1 %v3619_v48  ;;  %v3684_v48 = vsub.f32 %v1881_v11, %v3681_v12  ;;  %v2490_v47 = vsub.f32 %v2488_v36, %v2489_v42 }
 0x17e   : > { %3223 = vmatpush3.msra.mxu1 %v1391_v59 }
 0x17f   : > { %3225 = vmatmul.mubr.f32.vlgmr.msra.gmra.mxu1 %v3633_v24  ;;  %v1962_v15 = vand.u32 4294901760, %v3684_v48  ;;  %v2419_v24 = vsel %vm325_vm0, %v2402_v18, 0  ;;  %v2491_v52 = vand.u32 4294901760, %v2490_v47 }
 0x180   : > { %3238 = vmatprep.mubr.f32.mxu1 %v3645_v57  ;;  %v3700_v32 = vand.u32 4294901760, %v2419_v24 }
 0x181   : > { %v1963_v22 = vsub.f32 %v3684_v48, %v1962_v15 }
 0x182   : > { %v2498_v39 = vsub.f32 %v2419_v24, %v3700_v32 }
 0x183   : > { %v1964_v35 = vand.u32 4294901760, %v1963_v22 }
 0x184   : > { %v2499_v45 = vand.u32 4294901760, %v2498_v39 }
 0x186   : > { %v2500_v51 = vsub.f32 %v2498_v39, %v2499_v45 }
 0x188   : > { %v2501_v53 = vand.u32 4294901760, %v2500_v51 }
 0x1da   : > { %v1872_v21 = vpop.permute.xlu1 %1871 }
 0x1db   : > { %v1874_v27 = vsel %vm827_vm1, %v3363_v17, %v1872_v21 }
 0x1dc   : > { %v1912_v29 = vand.u32 4294901760, %v1874_v27  ;;  %v1868_v30 = vpop.permute.xlu0 %1867 }
 0x1dd   : > { %v1873_v31 = vsel %vm827_vm1, %v3364_v25, %v1868_v30 }
 0x1de   : > { %v2000_v33 = vsub.f32 %v1874_v27, %v1912_v29  ;;  %v1915_v34 = vand.u32 4294901760, %v1873_v31  ;;  %3227 = vmatprep.subr.mxu0 %v1912_v29 }
 0x1df   : > { %3228 = vmatpush3.msra.mxu0 %v1912_v29 }
 0x1e0   : > { %v2007_v37 = vsub.f32 %v1873_v31, %v1915_v34  ;;  %3229 = vmatprep.subr.mxu0 %v1915_v34  ;;  %v2001_v38 = vand.u32 4294901760, %v2000_v33 }
 0x1e1   : > { %3230 = vmatpush3.msra.mxu0 %v1915_v34 }
 0x1e2   : > { %3232 = vmatmul.mubr.f32.vlgmr.msra.gmra.mxu0 %v1964_v35  ;;  %3241 = vmatprep.subr.mxu0 %v2000_v33  ;;  %v2002_v40 = vsub.f32 %v2000_v33, %v2001_v38  ;;  %v2008_v41 = vand.u32 4294901760, %v2007_v37 }
 0x1e3   : > { %3242 = vmatpush3.msra.mxu0 %v2000_v33  ;;  %3245 = vmatprep.mubr.f32.mxu0 %v3652_v0 }
 0x1e4   : > { %3243 = vmatprep.subr.mxu0 %v2007_v37  ;;  %v2003_v43 = vand.u32 4294901760, %v2002_v40  ;;  %v2009_v44 = vsub.f32 %v2007_v37, %v2008_v41 }
 0x1e5   : > { %3244 = vmatpush3.msra.mxu0 %v2007_v37 }
 0x1e6   : > { %3234 = vmatprep.subr.mxu1 %v2003_v43  ;;  %3246 = vmatmul.mubr.f32.vlgmr.msra.gmra.mxu0 %v3684_v48  ;;  %v2010_v46 = vand.u32 4294901760, %v2009_v44 }
 0x1e7   : > { %3255 = vmatprep.subr.mxu0 %v2001_v38  ;;  %3235 = vmatpush3.msra.mxu1 %v2003_v43  ;;  %v2408_v20 = vpop.permute.xlu1 %2407 }
 0x1e8   : > { %3256 = vmatpush3.msra.mxu0 %v2001_v38  ;;  %3236 = vmatprep.subr.mxu1 %v2010_v46 }
 0x1e9   : > { %3257 = vmatprep.subr.mxu0 %v2008_v41  ;;  %3237 = vmatpush3.msra.mxu1 %v2010_v46 }
 0x1ea   : > { %3258 = vmatpush3.msra.mxu0 %v2008_v41  ;;  %3259 = vmatprep.mubr.f32.mxu0 %v3645_v57 }
 0x1eb   : > { %3239 = vmatmul.mubr.f32.vlgmr.msra.gmra.mxu1 %v3681_v12  ;;  %3248 = vmatprep.subr.mxu1 %v1912_v29  ;;  %v2390_v31 = vpop.permute.xlu1 %2389 }
 0x1ec   : > { %3260 = vmatmul.mubr.f32.vlgmr.msra.gmra.mxu0 %v3681_v12  ;;  %3249 = vmatpush3.msra.mxu1 %v1912_v29 }
 0x1ed   : > { %3250 = vmatprep.subr.mxu1 %v1915_v34  ;;  %3269 = vmatprep.subr.mxu0 %v3569_v16 }
 0x1ee   : > { %3251 = vmatpush3.msra.mxu1 %v1915_v34  ;;  %3252 = vmatprep.mubr.f32.mxu1 %v1952_v6 }
 0x1ef   : > { %3270 = vmatpush3.msra.mxu0 %v3569_v16  ;;  %3271 = vmatprep.mubr.f32.mxu0 %v2491_v52  ;;  %v2395_v44 = vpop.permute.xlu1 %2394 }
 0x1f0   : > { %3253 = vmatmul.mubr.f32.vlgmr.msra.gmra.mxu1 %v1962_v15  ;;  %3262 = vmatprep.subr.mxu1 %v1912_v29 }
 0x1f1   : > { %3272 = vmatmul.mubr.f32.vlgmr.msra.gmra.mxu0 %v2501_v53  ;;  %3263 = vmatpush3.msra.mxu1 %v1912_v29 }
 0x1f2   : > { %3264 = vmatprep.subr.mxu1 %v1915_v34  ;;  %3266 = vmatprep.mubr.f32.mxu1 %v3645_v57 }
 0x1f3   : > { %3265 = vmatpush3.msra.mxu1 %v1915_v34  ;;  %3279 = vmatprep.subr.mxu0 %v3572_v19 }
 0x1f4   : > { %3267 = vmatmul.mubr.f32.vlgmr.msra.gmra.mxu1 %v3681_v12  ;;  %3274 = vmatprep.subr.mxu1 %v3588_v26 }
 0x1f5   : > { %3275 = vmatpush3.msra.mxu1 %v3588_v26  ;;  %3276 = vmatprep.mubr.f32.mxu1 %v3697_v28 }
 0x1f6   : > { %3280 = vmatpush3.msra.mxu0 %v3572_v19  ;;  %3281 = vmatprep.mubr.f32.mxu0 %v2488_v36 }
 0x1f7   : > { %3282 = vmatmul.mubr.f32.vlgmr.msra.gmra.mxu0 %v2498_v39  ;;  %3284 = vmatprep.subr.mxu1 %v3569_v16 }
 0x1f8   : > { %3277 = vmatmul.mubr.f32.vlgmr.msra.gmra.mxu1 %v3700_v32  ;;  %3289 = vmatprep.subr.mxu0 %v3579_v23 }
 0x1f9   : > { %3285 = vmatpush3.msra.mxu1 %v3569_v16  ;;  %3286 = vmatprep.mubr.f32.mxu1 %v2489_v42 }
 0x1fa   : > { %3290 = vmatpush3.msra.mxu0 %v3579_v23  ;;  %3291 = vmatprep.mubr.f32.mxu0 %v3697_v28 }
 0x1fb   : > { %3292 = vmatmul.mubr.f32.vlgmr.msra.gmra.mxu0 %v3700_v32  ;;  %3294 = vmatprep.subr.mxu1 %v3569_v16 }
 0x1fc   : > { %3287 = vmatmul.mubr.f32.vlgmr.msra.gmra.mxu1 %v2499_v45 }
 0x1fd   : > { %3295 = vmatpush3.msra.mxu1 %v3569_v16  ;;  %3296 = vmatprep.mubr.f32.mxu1 %v3697_v28  ;;  %v2413_v28 = vpop.permute.xlu0 %2412 }
 0x200   : > { %3297 = vmatmul.mubr.f32.vlgmr.msra.gmra.mxu1 %v3700_v32 }
 0x22e   : > { %v3191_v19 = vpop.f32.mrf.mxu0 }
 0x230   : > { %v1432_v26 = vpop.f32.mrf.mxu0 }
 0x233   : > { %v3205_v55 = vpop.f32.mrf.mxu0 }
 0x235   : > { %v1605_v57 = vpop.f32.mrf.mxu0 }
 0x237   : > { %v3198_v54 = vpop.f32.mrf.mxu1 }
 0x238   : > { %v1530_v23 = vadd.f32 %v3198_v54, %v3191_v19 }
 0x239   : > { %v1523_v56 = vpop.f32.mrf.mxu1 }
 0x23a   : > { %v1524_v58 = vadd.f32 %v1523_v56, %v1432_v26  ;;  %v3219_v60 = vpop.f32.mrf.mxu0  ;;  %v1613_v61 = vadd.f32 %v3205_v55, %v1530_v23 }
 0x23b   : > { %v3212_v59 = vpop.f32.mrf.mxu1 }
 0x23c   : > { %v1606_v62 = vadd.f32 %v1605_v57, %v1524_v58  ;;  %v1772_v0 = vpop.f32.mrf.mxu0  ;;  %v1696_v1 = vadd.f32 %v3212_v59, %v1613_v61 }
 0x23d   : > { %v1687_v63 = vpop.f32.mrf.mxu1 }
 0x23e   : > { %v1688_v16 = vadd.f32 %v1687_v63, %v1606_v62  ;;  %v1779_v4 = vadd.f32 %v3219_v60, %v1696_v1 }
 0x23f   : > { %v3226_v2 = vpop.f32.mrf.mxu1 }
 0x240   : > { %v1773_v6 = vadd.f32 %v1772_v0, %v1688_v16  ;;  %v1858_v8 = vadd.f32 %v3226_v2, %v1779_v4 }
 0x241   : > { %v1851_v7 = vpop.f32.mrf.mxu1 }
 0x242   : > { %v1852_v10 = vadd.f32 %v1851_v7, %v1773_v6 }
 0x2a2   : > { %v3233_v3 = vpop.f32.mrf.mxu0 }
 0x2a3   : > { %v1967_v50 = vadd.f32 %v3233_v3, %v1858_v8 }
 0x2a4   : > { %v1956_v5 = vpop.f32.mrf.mxu0 }
 0x2a5   : > { %v1957_v13 = vadd.f32 %v1956_v5, %v1852_v10 }
 0x2a6   : > { %v3247_v9 = vpop.f32.mrf.mxu0 }
 0x2a8   : > { %v2129_v49 = vpop.f32.mrf.mxu0 }
 0x2ab   : > { %v3240_v11 = vpop.f32.mrf.mxu1 }
 0x2ac   : > { %v2054_v12 = vadd.f32 %v3240_v11, %v1967_v50  ;;  %v3261_v48 = vpop.f32.mrf.mxu0 }
 0x2ad   : > { %v2047_v14 = vpop.f32.mrf.mxu1 }
 0x2ae   : > { %v2048_v15 = vadd.f32 %v2047_v14, %v1957_v13  ;;  %v2296_v17 = vpop.f32.mrf.mxu0  ;;  %v2137_v18 = vadd.f32 %v3247_v9, %v2054_v12 }
 0x2b0   : > { %v3254_v21 = vpop.f32.mrf.mxu1  ;;  %v2130_v22 = vadd.f32 %v2129_v49, %v2048_v15 }
 0x2b1   : > { %v2220_v24 = vadd.f32 %v3254_v21, %v2137_v18  ;;  %v3273_v25 = vpop.f32.mrf.mxu0 }
 0x2b2   : > { %v2211_v27 = vpop.f32.mrf.mxu1  ;;  %v2504_v34 = vadd.f32 %v3273_v25, %v2413_v28 }
 0x2b3   : > { %v2212_v29 = vadd.f32 %v2211_v27, %v2130_v22  ;;  %v2493_v32 = vpop.f32.mrf.mxu0  ;;  %v2303_v33 = vadd.f32 %v3261_v48, %v2220_v24 }
 0x2b4   : > { %v3268_v30 = vpop.f32.mrf.mxu1  ;;  %v2494_v39 = vadd.f32 %v2493_v32, %v2408_v20 }
 0x2b5   : > { %v2297_v36 = vadd.f32 %v2296_v17, %v2212_v29  ;;  %v2382_v40 = vadd.f32 %v3268_v30, %v2303_v33 }
 0x2b6   : > { %v2375_v35 = vpop.f32.mrf.mxu1 }
 0x2b7   : > { %v3283_v37 = vpop.f32.mrf.mxu0  ;;  %v2376_v45 = vadd.f32 %v2375_v35, %v2297_v36  ;;  %v2398_v53 = vadd.f32 %v2395_v44, %v2382_v40 }
 0x2b8   : > { %v3278_v38 = vpop.f32.mrf.mxu1 }
 0x2b9   : > { %v2586_v41 = vadd.f32 %v3278_v38, %v2504_v34  ;;  %v2659_v42 = vpop.f32.mrf.mxu0  ;;  %v2397_v55 = vadd.f32 %v2390_v31, %v2376_v45  ;;  %v2400_v59 = vmax.f32 %v2398_v53, 0.0 }
 0x2ba   : > { %v2579_v43 = vpop.f32.mrf.mxu1 }
 0x2bb   : > { %v2580_v46 = vadd.f32 %v2579_v43, %v2494_v39  ;;  %v2667_v47 = vadd.f32 %v3283_v37, %v2586_v41  ;;  %v3293_v52 = vpop.f32.mrf.mxu0  ;;  %v2399_v63 = vmax.f32 %v2397_v55, 0.0 }
 0x2bc   : > { %v3288_v51 = vpop.f32.mrf.mxu1 }
 0x2bd   : > { %v2660_v19 = vadd.f32 %v2659_v42, %v2580_v46  ;;  %v2749_v26 = vadd.f32 %v3288_v51, %v2667_v47  ;;  %v2822_v23 = vpop.f32.mrf.mxu0 }
 0x2be   : > { %v2740_v54 = vpop.f32.mrf.mxu1 }
 0x2bf   : > { %v2741_v56 = vadd.f32 %v2740_v54, %v2660_v19  ;;  %v2829_v57 = vadd.f32 %v3293_v52, %v2749_v26 }
 0x2c0   : > { %v3298_v58 = vpop.f32.mrf.mxu1 }
 0x2c1   : > { %v2823_v60 = vadd.f32 %v2822_v23, %v2741_v56  ;;  %v2907_v61 = vadd.f32 %v3298_v58, %v2829_v57 }
 0x2c2   : > { %v2900_v62 = vpop.f32.mrf.mxu1 }
 0x2c3   : > { %v2911_v0 = vadd.f32 %v2907_v61, %v2400_v59  ;;  %v2901_v1 = vadd.f32 %v2900_v62, %v2823_v60 }
 0x2c5   : > { %v2913_v16 = vmax.f32 %v2911_v0, 0.0  ;;  %v2910_v2 = vadd.f32 %v2901_v1, %v2399_v63 }
 0x2c7   : > { %2915 = vst [vmem:[%s291_s17 + $0x8] sm:$0xff] %v2913_v16  ;;  %v2912_v3 = vmax.f32 %v2910_v2, 0.0 }
 0x2c9   : > { %2914 = vst [vmem:[%s291_s17] sm:$0xff] %v2912_v3 }
 0x2ca   : > { %3379 = shalt.err (!%p3376_p5)
}
 0x2cb   : > { %s3380_s12 = scalar_lea.hbm %s3740_s22, 256  ;;  %s3384_s17 = scalar_lea.hbm %s3796_s7, 512 }
 0x2cc   : > { %p3381_p6 = scmp.ne.s32.totalorder %s3740_s22, %s3380_s12  ;;  %p3385_p10 = scmp.lt.s32.totalorder %s3740_s22, %s3796_s7 }
 0x2cd   : > { %p3386_p11 = scmp.lt.s32.totalorder %s3384_s17, %s3380_s12 }
 0x2ce   : > { %p3382_p7 = pnand %p3381_p6, %p3530_p4 }
 0x2cf   : > { %p3387_p12 = por %p3386_p11, %p3385_p10 }
 0x2d0   : > { %p3383_p9 = pneg %p3382_p7 }
 0x2d2   : > { %p3388_p13 = pnand %p3387_p12, %p3383_p9 }
 0x2d4   : > { %3391 = shalt.err (!%p3388_p13)
}
 0x2d5   : > { %s3448_s21 = smov 128   ;;  %s3449_s30 = smov 8  }
 0x2d6   : > { %3299 = dma.vmem_to_hbm [thread:$0]  (%p3530_p4), %s3735_s19, 256, %s3740_s22, %s3744_s23, %s3448_s21, %s3448_s21, %s3449_s30  }
 0x2d7 PF: > { %p3305_p0 = scmp.ge.s32.totalorder %s3442_s29, 2  ;;  %s2946_s27 = sand.u32 1, %s3422_s24  }
 0x2d8   : > { %s2947_s8 = scalar_lea.sflag [#allocation5], %s2946_s27 }
 0x2d9   : > { %p3302_p1 = pnand %p3305_p0, %p3537_p8 }
 0x2db   : > { %p3303_p2 = pneg %p3302_p1 }
 0x2dd   : > { %3417 = dma.done.wait (%p3303_p2), %s2947_s8, 256  }
 0x2de   : > { %3419 = vsyncadd (%p3303_p2), %s2947_s8, 4294967040  ;;  %s20_s29 = sadd.s32 1, %s3442_s29   ;;  %s3799_s24 = smov %s3426_s25 }
 0x2df   : > { %p17_p3 = scmp.ge.s32.totalorder %s20_s29, 4   ;;  %s3800_s25 = smov %s3430_s26 }
 0x2e0   : > { %s3801_s26 = smov %s3543_s14  ;;  %s3802_s27 = smov %s3438_s28 }
 0x2e1   : > { %s3803_s28 = smov %s3805_s9  ;;  %19 = sbr.rel (!%p17_p3) target bundleno = 4 (0x4), region = 93 }
 0x2e6   :  { %2952 = vsyncpa [#allocation5], 1 }
 0x2e7   :  { %2954 = vsyncpa [#allocation5 + $0x1], 1 }

</bundles_post_ra>
